<compile_context>
chip_gen: v5e
topology: v5e:2x2
jax: 0.10.0
libtpu: 0.0.40
codegen_flags: <defaults>
</compile_context>

<pallas_src>
from functools import partial

import numpy as np
import jax
import jax.numpy as jnp
from jax.experimental import pallas as pl
from jax.experimental.pallas import tpu as pltpu


def _round_up(v, m):
    return ((v + m - 1) // m) * m


def _vmem_limit_bytes():
    """~75% of physical VMEM: ≈96 MiB on 128-MiB parts (v5e/v6e), ≈48 MiB on v7x."""
    cap = None
    try:
        cap = getattr(pltpu.get_tpu_info(), "vmem_capacity_bytes", None)
    except Exception:
        cap = None
    if not cap:
        cap = 64 * 1024 * 1024
    return int(min(cap * 3 // 4, 100 * 1024 * 1024))


def beta_vae_kernel(x_ref, eps_ref, ws_ref, bs_ref, wr_ref, br_ref,
                    loss_ref, recon_ref, msg_ref,
                    *, beta, batch, masked):
    """One batch tile of the fused betaVAE_Game forward.

    x_ref    : [TB, D]      flattened sender_input tile (compute dtype)
    eps_ref  : [TB, ZP]     N(0,1) noise, lane-padded Z -> ZP (f32)
    ws_ref   : [D, 2*ZP]    fused sender weight  [W_mu | W_logvar] (compute dtype)
    bs_ref   : [1, 2*ZP]    fused sender bias    [b_mu | b_logvar] (f32)
    wr_ref   : [ZP, D]      receiver weight (rows Z..ZP zero, compute dtype)
    br_ref   : [1, D]       receiver bias (f32)
    loss_ref : [1, 1, 128]  per-tile partial loss (scalar broadcast; summed in wrapper)
    recon_ref: [TB, D]      reconstruction logits (compute-dtype store; BCE uses f32)
    msg_ref  : [TB, ZP]     message (f32, lane-padded)
    """
    tb = x_ref.shape[0]
    zp = eps_ref.shape[1]

    x = x_ref[...]

    # --- sender: ONE fused MXU pass producing [mu | logvar] (f32 accumulate) --
    dists = jnp.dot(x, ws_ref[...], preferred_element_type=jnp.float32) + bs_ref[...]
    mu = dists[:, :zp]                      # static, lane-aligned slices
    logvar = dists[:, zp:]

    # --- reparametrize: message = mu + exp(logvar/2) * eps --------------------
    std = jnp.exp(0.5 * logvar)
    msg = mu + std * eps_ref[...]           # f32, [TB, ZP]

    # --- receiver: reconstruction logits (f32 accumulate) ---------------------
    # NOTE: in the bf16 path the MXU consumes msg rounded to bf16 while msg_ref
    # keeps the unrounded f32 message; the loss is computed from this f32 recon.
    recon = (jnp.dot(msg.astype(wr_ref.dtype), wr_ref[...],
                     preferred_element_type=jnp.float32) + br_ref[...])   # [TB, D]

    # --- reconstruction loss: BCE-with-logits (sum / batch), all f32 ----------
    xf = x.astype(jnp.float32)
    # Numerically stable: max(r,0) - r*x + log(1 + exp(-|r|)).
    bce = (jnp.maximum(recon, 0.0) - recon * xf
           + jnp.log(1.0 + jnp.exp(-jnp.abs(recon))))

    # --- KL divergence: reuse std (var = std*std) to save a second exp pass ---
    var = std * std
    klds = -0.5 * (1.0 + logvar - mu * mu - var)   # padded lanes are exactly 0

    # Row-reduce first; masking (if any) then only touches [TB, 1] vectors.
    bce_rows = jnp.sum(bce, axis=1, keepdims=True)
    kld_rows = jnp.sum(klds, axis=1, keepdims=True)
    if masked:  # only traced when the batch was zero-padded to a tile multiple
        rows = (pl.program_id(0) * tb
                + jax.lax.broadcasted_iota(jnp.int32, (tb, 1), 0))
        valid = (rows < batch).astype(jnp.float32)
        bce_rows = bce_rows * valid
        kld_rows = kld_rows * valid

    # Per-tile partial of: sum(BCE)/B + beta * mean(sum(klds, axis=1))
    part = (jnp.sum(bce_rows) + beta * jnp.sum(kld_rows)) * (1.0 / batch)
    loss_ref[...] = jnp.broadcast_to(part, loss_ref.shape)
    recon_ref[...] = recon.astype(recon_ref.dtype)   # cast only at the store
    msg_ref[...] = msg


def beta_vae_game(sender_input_nchw, eps, params, *, beta=4.0,
                  compute_dtype=jnp.bfloat16, recon_dtype=None, tile_b=512):
    """betaVAE_Game.forward (train mode).

    Returns (beta_vae_loss, (reconstruction_logits, message, message_length)).
    """
    # TODO(synk): eval-mode branch (message = mu, no reparametrization) and the
    # core.Interaction log object are not reproduced; message_length is ones.
    B = sender_input_nchw.shape[0]
    D = int(np.prod(sender_input_nchw.shape[1:]))
    Z = eps.shape[1]
    ZP = _round_up(Z, 128)                 # lane-dense latent width (no over-pad)

    recon_dt = compute_dtype if recon_dtype is None else recon_dtype

    wmu, bmu, wlv, blv, wr, br = [jnp.asarray(p, jnp.float32) for p in params]

    # Fuse + lane-pad sender params: one [D, 2*ZP] matmul replaces two tiny ones.
    # Zero padding keeps the math exact: padded mu/logvar columns are 0, so the
    # padded KL lanes are exactly 0 and padded receiver rows contribute 0.
    ws = (jnp.zeros((D, 2 * ZP), jnp.float32)
          .at[:, :Z].set(wmu).at[:, ZP:ZP + Z].set(wlv))
    bs = (jnp.zeros((1, 2 * ZP), jnp.float32)
          .at[:, :Z].set(bmu).at[:, ZP:ZP + Z].set(blv))
    wrp = jnp.zeros((ZP, D), jnp.float32).at[:Z, :].set(wr)

    # Batch tiling: sublane quantum from the compute dtype (8 f32 / 16 bf16),
    # tile cap 512 rows (bf16) / 256 (f32), and shrink the tile so the grid has
    # >= 4 steps when the batch allows it (keeps both v7x TensorCores fed and
    # gives each core >= 2 steps of DMA/compute overlap).
    itemsize = jnp.dtype(compute_dtype).itemsize
    q = max(8, 32 // max(itemsize, 1))
    cap = int(tile_b) if itemsize <= 2 else max(q, int(tile_b) // 2)
    TB = _round_up(min(cap, _round_up(B, q)), q)
    TB = max(q, min(TB, _round_up(max(q, -(-B // 4)), q)))
    Bp = _round_up(B, TB)
    G = Bp // TB

    x = sender_input_nchw.reshape(B, D).astype(jnp.float32)
    if Bp != B:
        x = jnp.zeros((Bp, D), jnp.float32).at[:B].set(x)
    x = x.astype(compute_dtype)
    eps_p = jnp.zeros((Bp, ZP), jnp.float32).at[:B, :Z].set(eps.astype(jnp.float32))

    ws_c = ws.astype(compute_dtype)
    wr_c = wrp.astype(compute_dtype)

    kern = partial(beta_vae_kernel, beta=float(beta), batch=int(B),
                   masked=(Bp != B))

    def _const_spec(shape, single_buffer):
        # Grid-invariant operand (constant index_map): stays resident in VMEM.
        # Single-buffering reclaims the never-used second pipeline buffer.
        index_map = lambda i: (0,) * len(shape)
        if single_buffer:
            return pl.BlockSpec(shape, index_map, pipeline_mode=pl.Buffered(1))
        return pl.BlockSpec(shape, index_map)

    def _call(single_buffer_weights):
        return pl.pallas_call(
            kern,
            grid=(G,),
            out_shape=(
                jax.ShapeDtypeStruct((G, 1, 128), jnp.float32),   # per-tile partial loss
                jax.ShapeDtypeStruct((Bp, D), recon_dt),          # receiver_output logits
                jax.ShapeDtypeStruct((Bp, ZP), jnp.float32),      # message (lane-padded)
            ),
            in_specs=[
                pl.BlockSpec((TB, D), lambda i: (i, 0)),          # x tile
                pl.BlockSpec((TB, ZP), lambda i: (i, 0)),         # eps tile
                _const_spec((D, 2 * ZP), single_buffer_weights),  # fused sender W
                _const_spec((1, 2 * ZP), single_buffer_weights),  # fused sender b
                _const_spec((ZP, D), single_buffer_weights),      # receiver W
                _const_spec((1, D), single_buffer_weights),       # receiver b
            ],
            out_specs=(
                pl.BlockSpec((1, 1, 128), lambda i: (i, 0, 0)),
                pl.BlockSpec((TB, D), lambda i: (i, 0)),
                pl.BlockSpec((TB, ZP), lambda i: (i, 0)),
            ),
            compiler_params=pltpu.CompilerParams(
                dimension_semantics=("parallel",),     # batch tiles are independent
                vmem_limit_bytes=_vmem_limit_bytes(),
            ),
        )(x, eps_p, ws_c, bs, wr_c, br)

    try:
        loss_parts, recon_p, msg_p = _call(True)
    except Exception:
        # pipeline_mode=pl.Buffered(1) not supported on this jax build;
        # fall back to default (double-buffered) weight residency.
        loss_parts, recon_p, msg_p = _call(False)

    loss = jnp.sum(loss_parts[:, 0, 0])
    recon = recon_p[:B].reshape(sender_input_nchw.shape)
    msg = msg_p[:B, :Z]
    message_length = jnp.ones((B,), jnp.float32)   # as in the Interaction log
    return loss, (recon, msg, message_length)


def _reference(x_nchw, eps, params, beta):
    """Pure-JAX f32 reference of the same forward for correctness checking."""
    B = x_nchw.shape[0]
    x = x_nchw.reshape(B, -1).astype(jnp.float32)
    wmu, bmu, wlv, blv, wr, br = params
    mu = x @ wmu + bmu
    logvar = x @ wlv + blv
    msg = mu + jnp.exp(logvar / 2.0) * eps
    recon = msg @ wr + br
    bce = (jnp.maximum(recon, 0.0) - recon * x
           + jnp.log(1.0 + jnp.exp(-jnp.abs(recon))))
    recon_loss = jnp.sum(bce) / B
    klds = -0.5 * (1.0 + logvar - mu ** 2 - jnp.exp(logvar))
    total_kld = jnp.mean(jnp.sum(klds, axis=1))
    return recon_loss + beta * total_kld, recon, msg


if __name__ == "__main__":
    # Small shapes consistent with the module: NCHW images, z_dim latents.
    B, C, H, W = 8, 1, 16, 16
    D = C * H * W
    Z = 10          # z_dim
    BETA = 4.0

    key = jax.random.PRNGKey(0)
    kx, keps, k1, k2, k3, k4, k5, k6 = jax.random.split(key, 8)

    # Binary dsprites-like input in {0,1} (targets for bernoulli BCE); exact in bf16.
    sender_input = (jax.random.uniform(kx, (B, C, H, W)) > 0.7).astype(jnp.float32)
    label = jnp.arange(B, dtype=jnp.int32)          # unused by the compute path

    # Reparametrization noise (torch .normal_() equivalent), deterministic.
    eps = jax.random.normal(keps, (B, Z), dtype=jnp.float32)

    # Deterministic synthetic sender / receiver parameters.
    params = (
        0.05 * jax.random.normal(k1, (D, Z), dtype=jnp.float32),  # W_mu
        0.01 * jax.random.normal(k2, (1, Z), dtype=jnp.float32),  # b_mu
        0.05 * jax.random.normal(k3, (D, Z), dtype=jnp.float32),  # W_logvar
        0.01 * jax.random.normal(k4, (1, Z), dtype=jnp.float32),  # b_logvar
        0.05 * jax.random.normal(k5, (Z, D), dtype=jnp.float32),  # W_receiver
        0.01 * jax.random.normal(k6, (1, D), dtype=jnp.float32),  # b_receiver
    )

    ref_loss, ref_recon, _ = _reference(sender_input, eps, params, BETA)
    ref_recon = np.asarray(ref_recon).reshape(sender_input.shape)

    # f32 path: bit-faithful to the torch module; tight tolerance vs reference.
    loss32, (recon32, msg32, len32) = beta_vae_game(
        sender_input, eps, params, beta=BETA,
        compute_dtype=jnp.float32, recon_dtype=jnp.float32)
    jax.block_until_ready((loss32, recon32, msg32, len32))
    np.testing.assert_allclose(np.asarray(loss32), np.asarray(ref_loss),
                               rtol=1e-5, atol=1e-4)
    np.testing.assert_allclose(np.asarray(recon32), ref_recon,
                               rtol=1e-3, atol=1e-3)
    assert recon32.shape == sender_input.shape
    assert msg32.shape == (B, Z)
    assert len32.shape == (B,)

    # Default fast path: bf16 x / weights / recon store, f32 accumulation & loss.
    loss_bf, (recon_bf, msg_bf, _) = beta_vae_game(sender_input, eps, params, beta=BETA)
    jax.block_until_ready((loss_bf, recon_bf, msg_bf))
    np.testing.assert_allclose(np.asarray(loss_bf), np.asarray(ref_loss),
                               rtol=2e-2, atol=0.5)
    np.testing.assert_allclose(np.asarray(recon_bf.astype(jnp.float32)), ref_recon,
                               rtol=0.0, atol=0.05)
    assert recon_bf.dtype == jnp.bfloat16
    assert msg_bf.shape == (B, Z)

    print("KERNEL_OK")
</pallas_src>

<mosaic_0001>
module attributes {stable_mosaic.version = 11 : i64} {
  func.func @beta_vae_kernel(%arg0: i32, %arg1: memref<8x256xf32, #tpu.memory_space<vmem>>, %arg2: memref<8x128xf32, #tpu.memory_space<vmem>>, %arg3: memref<256x256xf32, #tpu.memory_space<vmem>>, %arg4: memref<1x256xf32, #tpu.memory_space<vmem>>, %arg5: memref<128x256xf32, #tpu.memory_space<vmem>>, %arg6: memref<1x256xf32, #tpu.memory_space<vmem>>, %arg7: memref<1x1x128xf32, #tpu.memory_space<vmem>>, %arg8: memref<8x256xf32, #tpu.memory_space<vmem>>, %arg9: memref<8x128xf32, #tpu.memory_space<vmem>>) attributes {dimension_semantics = [#tpu.dimension_semantics<parallel>], iteration_bounds = array<i64: 1>, scalar_prefetch = 0 : i64, scratch_operands = 0 : i64, tpu.core_type = #tpu.core_type<tc>, window_params = [{transform_indices = @transform_0, window_bounds = array<i64: 8, 256>}, {transform_indices = @transform_1, window_bounds = array<i64: 8, 128>}, {pipeline_mode = #tpu.pipeline_mode<synchronous>, transform_indices = @transform_2, window_bounds = array<i64: 256, 256>}, {pipeline_mode = #tpu.pipeline_mode<synchronous>, transform_indices = @transform_3, window_bounds = array<i64: 1, 256>}, {pipeline_mode = #tpu.pipeline_mode<synchronous>, transform_indices = @transform_4, window_bounds = array<i64: 128, 256>}, {pipeline_mode = #tpu.pipeline_mode<synchronous>, transform_indices = @transform_5, window_bounds = array<i64: 1, 256>}, {transform_indices = @transform_6, window_bounds = array<i64: 1, 1, 128>}, {transform_indices = @transform_7, window_bounds = array<i64: 8, 256>}, {transform_indices = @transform_8, window_bounds = array<i64: 8, 128>}]} {
    %c0 = arith.constant 0 : index
    %c0_0 = arith.constant 0 : index
    %0 = vector.load %arg1[%c0, %c0_0] : memref<8x256xf32, #tpu.memory_space<vmem>>, vector<8x256xf32>
    %c0_1 = arith.constant 0 : index
    %c0_2 = arith.constant 0 : index
    %1 = vector.load %arg3[%c0_1, %c0_2] : memref<256x256xf32, #tpu.memory_space<vmem>>, vector<256x256xf32>
    %cst = arith.constant dense<0.000000e+00> : vector<8x256xf32>
    %2 = tpu.matmul %0, %1, %cst {dimension_numbers = #tpu.dot_dimension_numbers<[1], [0], [0], [1], [0, 0, 1, 1], [], []>} : vector<8x256xf32>, vector<256x256xf32>, vector<8x256xf32> -> vector<8x256xf32>
    %c0_3 = arith.constant 0 : index
    %c0_4 = arith.constant 0 : index
    %3 = vector.load %arg4[%c0_3, %c0_4] : memref<1x256xf32, #tpu.memory_space<vmem>>, vector<1x256xf32>
    %4 = vector.broadcast %3 : vector<1x256xf32> to vector<8x256xf32>
    %5 = arith.addf %2, %4 : vector<8x256xf32>
    %6 = vector.extract_strided_slice %5 {offsets = [0, 0], sizes = [8, 128], strides = [1, 1]} : vector<8x256xf32> to vector<8x128xf32>
    %7 = vector.extract_strided_slice %5 {offsets = [0, 128], sizes = [8, 128], strides = [1, 1]} : vector<8x256xf32> to vector<8x128xf32>
    %cst_5 = arith.constant 5.000000e-01 : f32
    %8 = vector.broadcast %cst_5 : f32 to vector<8x128xf32>
    %9 = arith.mulf %8, %7 : vector<8x128xf32>
    %10 = math.exp %9 : vector<8x128xf32>
    %c0_6 = arith.constant 0 : index
    %c0_7 = arith.constant 0 : index
    %11 = vector.load %arg2[%c0_6, %c0_7] : memref<8x128xf32, #tpu.memory_space<vmem>>, vector<8x128xf32>
    %12 = arith.mulf %10, %11 : vector<8x128xf32>
    %13 = arith.addf %6, %12 : vector<8x128xf32>
    %c0_8 = arith.constant 0 : index
    %c0_9 = arith.constant 0 : index
    %14 = vector.load %arg5[%c0_8, %c0_9] : memref<128x256xf32, #tpu.memory_space<vmem>>, vector<128x256xf32>
    %cst_10 = arith.constant dense<0.000000e+00> : vector<8x256xf32>
    %15 = tpu.matmul %13, %14, %cst_10 {dimension_numbers = #tpu.dot_dimension_numbers<[1], [0], [0], [1], [0, 0, 1, 1], [], []>} : vector<8x128xf32>, vector<128x256xf32>, vector<8x256xf32> -> vector<8x256xf32>
    %c0_11 = arith.constant 0 : index
    %c0_12 = arith.constant 0 : index
    %16 = vector.load %arg6[%c0_11, %c0_12] : memref<1x256xf32, #tpu.memory_space<vmem>>, vector<1x256xf32>
    %17 = vector.broadcast %16 : vector<1x256xf32> to vector<8x256xf32>
    %18 = arith.addf %15, %17 : vector<8x256xf32>
    %cst_13 = arith.constant 0.000000e+00 : f32
    %19 = vector.broadcast %cst_13 : f32 to vector<8x256xf32>
    %20 = arith.maximumf %18, %19 : vector<8x256xf32>
    %21 = arith.mulf %18, %0 : vector<8x256xf32>
    %22 = arith.subf %20, %21 : vector<8x256xf32>
    %23 = math.absf %18 : vector<8x256xf32>
    %cst_14 = arith.constant 0.000000e+00 : f32
    %24 = vector.broadcast %cst_14 : f32 to vector<8x256xf32>
    %25 = arith.subf %24, %23 : vector<8x256xf32>
    %26 = math.exp %25 : vector<8x256xf32>
    %cst_15 = arith.constant 1.000000e+00 : f32
    %27 = vector.broadcast %cst_15 : f32 to vector<8x256xf32>
    %28 = arith.addf %27, %26 : vector<8x256xf32>
    %29 = math.log %28 : vector<8x256xf32>
    %30 = arith.addf %22, %29 : vector<8x256xf32>
    %31 = arith.mulf %10, %10 : vector<8x128xf32>
    %cst_16 = arith.constant 1.000000e+00 : f32
    %32 = vector.broadcast %cst_16 : f32 to vector<8x128xf32>
    %33 = arith.addf %32, %7 : vector<8x128xf32>
    %34 = arith.mulf %6, %6 : vector<8x128xf32>
    %35 = arith.subf %33, %34 : vector<8x128xf32>
    %36 = arith.subf %35, %31 : vector<8x128xf32>
    %cst_17 = arith.constant -5.000000e-01 : f32
    %37 = vector.broadcast %cst_17 : f32 to vector<8x128xf32>
    %38 = arith.mulf %37, %36 : vector<8x128xf32>
    %cst_18 = arith.constant dense<0.000000e+00> : vector<8xf32>
    %39 = vector.multi_reduction <add>, %30, %cst_18 [1] : vector<8x256xf32> to vector<8xf32>
    %40 = vector.shape_cast %39 : vector<8xf32> to vector<8x1xf32>
    %cst_19 = arith.constant dense<0.000000e+00> : vector<8xf32>
    %41 = vector.multi_reduction <add>, %38, %cst_19 [1] : vector<8x128xf32> to vector<8xf32>
    %42 = vector.shape_cast %41 : vector<8xf32> to vector<8x1xf32>
    %43 = vector.shape_cast %40 : vector<8x1xf32> to vector<1x8x1xf32>
    %cst_20 = arith.constant dense<0.000000e+00> : vector<1xf32>
    %44 = vector.multi_reduction <add>, %43, %cst_20 [1, 2] : vector<1x8x1xf32> to vector<1xf32>
    %45 = vector.shape_cast %44 : vector<1xf32> to vector<1x1x1xf32>
    %46 = vector.extract %45[0, 0, 0] : f32 from vector<1x1x1xf32>
    %47 = vector.shape_cast %42 : vector<8x1xf32> to vector<1x8x1xf32>
    %cst_21 = arith.constant dense<0.000000e+00> : vector<1xf32>
    %48 = vector.multi_reduction <add>, %47, %cst_21 [1, 2] : vector<1x8x1xf32> to vector<1xf32>
    %49 = vector.shape_cast %48 : vector<1xf32> to vector<1x1x1xf32>
    %50 = vector.extract %49[0, 0, 0] : f32 from vector<1x1x1xf32>
    %cst_22 = arith.constant 4.000000e+00 : f32
    %51 = arith.mulf %cst_22, %50 : f32
    %52 = arith.addf %46, %51 : f32
    %cst_23 = arith.constant 1.250000e-01 : f32
    %53 = arith.mulf %52, %cst_23 : f32
    %54 = vector.broadcast %53 : f32 to vector<1x1x128xf32>
    %c0_24 = arith.constant 0 : index
    %c0_25 = arith.constant 0 : index
    %c0_26 = arith.constant 0 : index
    %55 = vector.load %arg7[%c0_24, %c0_25, %c0_26] : memref<1x1x128xf32, #tpu.memory_space<vmem>>, vector<1x1x128xf32>
    tpu.vector_store %arg7[%c0_24, %c0_25, %c0_26], %54 {strides = array<i32>} : memref<1x1x128xf32, #tpu.memory_space<vmem>>, vector<1x1x128xf32>,
    %c0_27 = arith.constant 0 : index
    %c0_28 = arith.constant 0 : index
    %56 = vector.load %arg8[%c0_27, %c0_28] : memref<8x256xf32, #tpu.memory_space<vmem>>, vector<8x256xf32>
    tpu.vector_store %arg8[%c0_27, %c0_28], %18 {strides = array<i32>} : memref<8x256xf32, #tpu.memory_space<vmem>>, vector<8x256xf32>,
    %c0_29 = arith.constant 0 : index
    %c0_30 = arith.constant 0 : index
    %57 = vector.load %arg9[%c0_29, %c0_30] : memref<8x128xf32, #tpu.memory_space<vmem>>, vector<8x128xf32>
    tpu.vector_store %arg9[%c0_29, %c0_30], %13 {strides = array<i32>} : memref<8x128xf32, #tpu.memory_space<vmem>>, vector<8x128xf32>,
    return
  }
  func.func @transform_0(%arg0: i32) -> (i32, i32) {
    %c0_i32 = arith.constant 0 : i32
    %c0_i32_0 = arith.constant 0 : i32
    return %arg0, %c0_i32 : i32, i32
  }
  func.func @transform_1(%arg0: i32) -> (i32, i32) {
    %c0_i32 = arith.constant 0 : i32
    %c0_i32_0 = arith.constant 0 : i32
    return %arg0, %c0_i32 : i32, i32
  }
  func.func @transform_2(%arg0: i32) -> (i32, i32) {
    %c0_i32 = arith.constant 0 : i32
    %c0_i32_0 = arith.constant 0 : i32
    %c0_i32_1 = arith.constant 0 : i32
    return %c0_i32, %c0_i32_0 : i32, i32
  }
  func.func @transform_3(%arg0: i32) -> (i32, i32) {
    %c0_i32 = arith.constant 0 : i32
    %c0_i32_0 = arith.constant 0 : i32
    %c0_i32_1 = arith.constant 0 : i32
    return %c0_i32, %c0_i32_0 : i32, i32
  }
  func.func @transform_4(%arg0: i32) -> (i32, i32) {
    %c0_i32 = arith.constant 0 : i32
    %c0_i32_0 = arith.constant 0 : i32
    %c0_i32_1 = arith.constant 0 : i32
    return %c0_i32, %c0_i32_0 : i32, i32
  }
  func.func @transform_5(%arg0: i32) -> (i32, i32) {
    %c0_i32 = arith.constant 0 : i32
    %c0_i32_0 = arith.constant 0 : i32
    %c0_i32_1 = arith.constant 0 : i32
    return %c0_i32, %c0_i32_0 : i32, i32
  }
  func.func @transform_6(%arg0: i32) -> (i32, i32, i32) {
    %c0_i32 = arith.constant 0 : i32
    %c0_i32_0 = arith.constant 0 : i32
    %c0_i32_1 = arith.constant 0 : i32
    return %arg0, %c0_i32, %c0_i32_0 : i32, i32, i32
  }
  func.func @transform_7(%arg0: i32) -> (i32, i32) {
    %c0_i32 = arith.constant 0 : i32
    %c0_i32_0 = arith.constant 0 : i32
    return %arg0, %c0_i32 : i32, i32
  }
  func.func @transform_8(%arg0: i32) -> (i32, i32) {
    %c0_i32 = arith.constant 0 : i32
    %c0_i32_0 = arith.constant 0 : i32
    return %arg0, %c0_i32 : i32, i32
  }
}

module attributes {stable_mosaic.version = 11 : i64} {
  func.func @beta_vae_kernel(%arg0: i32, %arg1: memref<8x256xf32, #tpu.memory_space<vmem>>, %arg2: memref<8x128xf32, #tpu.memory_space<vmem>>, %arg3: memref<256x256xf32, #tpu.memory_space<vmem>>, %arg4: memref<1x256xf32, #tpu.memory_space<vmem>>, %arg5: memref<128x256xf32, #tpu.memory_space<vmem>>, %arg6: memref<1x256xf32, #tpu.memory_space<vmem>>, %arg7: memref<1x1x128xf32, #tpu.memory_space<vmem>>, %arg8: memref<8x256xf32, #tpu.memory_space<vmem>>, %arg9: memref<8x128xf32, #tpu.memory_space<vmem>>) attributes {dimension_semantics = [#tpu.dimension_semantics<parallel>], iteration_bounds = array<i64: 1>, scalar_prefetch = 0 : i64, scratch_operands = 0 : i64, tpu.core_type = #tpu.core_type<tc>, window_params = [{transform_indices = @transform_0, window_bounds = array<i64: 8, 256>}, {transform_indices = @transform_1, window_bounds = array<i64: 8, 128>}, {pipeline_mode = #tpu.pipeline_mode<synchronous>, transform_indices = @transform_2, window_bounds = array<i64: 256, 256>}, {pipeline_mode = #tpu.pipeline_mode<synchronous>, transform_indices = @transform_3, window_bounds = array<i64: 1, 256>}, {pipeline_mode = #tpu.pipeline_mode<synchronous>, transform_indices = @transform_4, window_bounds = array<i64: 128, 256>}, {pipeline_mode = #tpu.pipeline_mode<synchronous>, transform_indices = @transform_5, window_bounds = array<i64: 1, 256>}, {transform_indices = @transform_6, window_bounds = array<i64: 1, 1, 128>}, {transform_indices = @transform_7, window_bounds = array<i64: 8, 256>}, {transform_indices = @transform_8, window_bounds = array<i64: 8, 128>}]} {
    %c0 = arith.constant 0 : index
    %c0_0 = arith.constant 0 : index
    %0 = vector.load %arg1[%c0, %c0_0] : memref<8x256xf32, #tpu.memory_space<vmem>>, vector<8x256xf32>
    %c0_1 = arith.constant 0 : index
    %c0_2 = arith.constant 0 : index
    %1 = vector.load %arg3[%c0_1, %c0_2] : memref<256x256xf32, #tpu.memory_space<vmem>>, vector<256x256xf32>
    %cst = arith.constant dense<0.000000e+00> : vector<8x256xf32>
    %2 = tpu.matmul %0, %1, %cst {dimension_numbers = #tpu.dot_dimension_numbers<[1], [0], [0], [1], [0, 0, 1, 1], [], []>} : vector<8x256xf32>, vector<256x256xf32>, vector<8x256xf32> -> vector<8x256xf32>
    %c0_3 = arith.constant 0 : index
    %c0_4 = arith.constant 0 : index
    %3 = vector.load %arg4[%c0_3, %c0_4] : memref<1x256xf32, #tpu.memory_space<vmem>>, vector<1x256xf32>
    %4 = vector.broadcast %3 : vector<1x256xf32> to vector<8x256xf32>
    %5 = arith.addf %2, %4 : vector<8x256xf32>
    %6 = vector.extract_strided_slice %5 {offsets = [0, 0], sizes = [8, 128], strides = [1, 1]} : vector<8x256xf32> to vector<8x128xf32>
    %7 = vector.extract_strided_slice %5 {offsets = [0, 128], sizes = [8, 128], strides = [1, 1]} : vector<8x256xf32> to vector<8x128xf32>
    %cst_5 = arith.constant 5.000000e-01 : f32
    %8 = vector.broadcast %cst_5 : f32 to vector<8x128xf32>
    %9 = arith.mulf %8, %7 : vector<8x128xf32>
    %10 = math.exp %9 : vector<8x128xf32>
    %c0_6 = arith.constant 0 : index
    %c0_7 = arith.constant 0 : index
    %11 = vector.load %arg2[%c0_6, %c0_7] : memref<8x128xf32, #tpu.memory_space<vmem>>, vector<8x128xf32>
    %12 = arith.mulf %10, %11 : vector<8x128xf32>
    %13 = arith.addf %6, %12 : vector<8x128xf32>
    %c0_8 = arith.constant 0 : index
    %c0_9 = arith.constant 0 : index
    %14 = vector.load %arg5[%c0_8, %c0_9] : memref<128x256xf32, #tpu.memory_space<vmem>>, vector<128x256xf32>
    %cst_10 = arith.constant dense<0.000000e+00> : vector<8x256xf32>
    %15 = tpu.matmul %13, %14, %cst_10 {dimension_numbers = #tpu.dot_dimension_numbers<[1], [0], [0], [1], [0, 0, 1, 1], [], []>} : vector<8x128xf32>, vector<128x256xf32>, vector<8x256xf32> -> vector<8x256xf32>
    %c0_11 = arith.constant 0 : index
    %c0_12 = arith.constant 0 : index
    %16 = vector.load %arg6[%c0_11, %c0_12] : memref<1x256xf32, #tpu.memory_space<vmem>>, vector<1x256xf32>
    %17 = vector.broadcast %16 : vector<1x256xf32> to vector<8x256xf32>
    %18 = arith.addf %15, %17 : vector<8x256xf32>
    %cst_13 = arith.constant 0.000000e+00 : f32
    %19 = vector.broadcast %cst_13 : f32 to vector<8x256xf32>
    %20 = arith.maximumf %18, %19 : vector<8x256xf32>
    %21 = arith.mulf %18, %0 : vector<8x256xf32>
    %22 = arith.subf %20, %21 : vector<8x256xf32>
    %23 = math.absf %18 : vector<8x256xf32>
    %cst_14 = arith.constant 0.000000e+00 : f32
    %24 = vector.broadcast %cst_14 : f32 to vector<8x256xf32>
    %25 = arith.subf %24, %23 : vector<8x256xf32>
    %26 = math.exp %25 : vector<8x256xf32>
    %cst_15 = arith.constant 1.000000e+00 : f32
    %27 = vector.broadcast %cst_15 : f32 to vector<8x256xf32>
    %28 = arith.addf %27, %26 : vector<8x256xf32>
    %29 = math.log %28 : vector<8x256xf32>
    %30 = arith.addf %22, %29 : vector<8x256xf32>
    %31 = arith.mulf %10, %10 : vector<8x128xf32>
    %cst_16 = arith.constant 1.000000e+00 : f32
    %32 = vector.broadcast %cst_16 : f32 to vector<8x128xf32>
    %33 = arith.addf %32, %7 : vector<8x128xf32>
    %34 = arith.mulf %6, %6 : vector<8x128xf32>
    %35 = arith.subf %33, %34 : vector<8x128xf32>
    %36 = arith.subf %35, %31 : vector<8x128xf32>
    %cst_17 = arith.constant -5.000000e-01 : f32
    %37 = vector.broadcast %cst_17 : f32 to vector<8x128xf32>
    %38 = arith.mulf %37, %36 : vector<8x128xf32>
    %cst_18 = arith.constant dense<0.000000e+00> : vector<8xf32>
    %39 = vector.multi_reduction <add>, %30, %cst_18 [1] : vector<8x256xf32> to vector<8xf32>
    %40 = vector.shape_cast %39 : vector<8xf32> to vector<8x1xf32>
    %cst_19 = arith.constant dense<0.000000e+00> : vector<8xf32>
    %41 = vector.multi_reduction <add>, %38, %cst_19 [1] : vector<8x128xf32> to vector<8xf32>
    %42 = vector.shape_cast %41 : vector<8xf32> to vector<8x1xf32>
    %43 = vector.shape_cast %40 : vector<8x1xf32> to vector<1x8x1xf32>
    %cst_20 = arith.constant dense<0.000000e+00> : vector<1xf32>
    %44 = vector.multi_reduction <add>, %43, %cst_20 [1, 2] : vector<1x8x1xf32> to vector<1xf32>
    %45 = vector.shape_cast %44 : vector<1xf32> to vector<1x1x1xf32>
    %46 = vector.extract %45[0, 0, 0] : f32 from vector<1x1x1xf32>
    %47 = vector.shape_cast %42 : vector<8x1xf32> to vector<1x8x1xf32>
    %cst_21 = arith.constant dense<0.000000e+00> : vector<1xf32>
    %48 = vector.multi_reduction <add>, %47, %cst_21 [1, 2] : vector<1x8x1xf32> to vector<1xf32>
    %49 = vector.shape_cast %48 : vector<1xf32> to vector<1x1x1xf32>
    %50 = vector.extract %49[0, 0, 0] : f32 from vector<1x1x1xf32>
    %cst_22 = arith.constant 4.000000e+00 : f32
    %51 = arith.mulf %cst_22, %50 : f32
    %52 = arith.addf %46, %51 : f32
    %cst_23 = arith.constant 1.250000e-01 : f32
    %53 = arith.mulf %52, %cst_23 : f32
    %54 = vector.broadcast %53 : f32 to vector<1x1x128xf32>
    %c0_24 = arith.constant 0 : index
    %c0_25 = arith.constant 0 : index
    %c0_26 = arith.constant 0 : index
    %55 = vector.load %arg7[%c0_24, %c0_25, %c0_26] : memref<1x1x128xf32, #tpu.memory_space<vmem>>, vector<1x1x128xf32>
    tpu.vector_store %arg7[%c0_24, %c0_25, %c0_26], %54 {strides = array<i32>} : memref<1x1x128xf32, #tpu.memory_space<vmem>>, vector<1x1x128xf32>,
    %c0_27 = arith.constant 0 : index
    %c0_28 = arith.constant 0 : index
    %56 = vector.load %arg8[%c0_27, %c0_28] : memref<8x256xf32, #tpu.memory_space<vmem>>, vector<8x256xf32>
    tpu.vector_store %arg8[%c0_27, %c0_28], %18 {strides = array<i32>} : memref<8x256xf32, #tpu.memory_space<vmem>>, vector<8x256xf32>,
    %c0_29 = arith.constant 0 : index
    %c0_30 = arith.constant 0 : index
    %57 = vector.load %arg9[%c0_29, %c0_30] : memref<8x128xf32, #tpu.memory_space<vmem>>, vector<8x128xf32>
    tpu.vector_store %arg9[%c0_29, %c0_30], %13 {strides = array<i32>} : memref<8x128xf32, #tpu.memory_space<vmem>>, vector<8x128xf32>,
    return
  }
  func.func @transform_0(%arg0: i32) -> (i32, i32) {
    %c0_i32 = arith.constant 0 : i32
    %c0_i32_0 = arith.constant 0 : i32
    return %arg0, %c0_i32 : i32, i32
  }
  func.func @transform_1(%arg0: i32) -> (i32, i32) {
    %c0_i32 = arith.constant 0 : i32
    %c0_i32_0 = arith.constant 0 : i32
    return %arg0, %c0_i32 : i32, i32
  }
  func.func @transform_2(%arg0: i32) -> (i32, i32) {
    %c0_i32 = arith.constant 0 : i32
    %c0_i32_0 = arith.constant 0 : i32
    %c0_i32_1 = arith.constant 0 : i32
    return %c0_i32, %c0_i32_0 : i32, i32
  }
  func.func @transform_3(%arg0: i32) -> (i32, i32) {
    %c0_i32 = arith.constant 0 : i32
    %c0_i32_0 = arith.constant 0 : i32
    %c0_i32_1 = arith.constant 0 : i32
    return %c0_i32, %c0_i32_0 : i32, i32
  }
  func.func @transform_4(%arg0: i32) -> (i32, i32) {
    %c0_i32 = arith.constant 0 : i32
    %c0_i32_0 = arith.constant 0 : i32
    %c0_i32_1 = arith.constant 0 : i32
    return %c0_i32, %c0_i32_0 : i32, i32
  }
  func.func @transform_5(%arg0: i32) -> (i32, i32) {
    %c0_i32 = arith.constant 0 : i32
    %c0_i32_0 = arith.constant 0 : i32
    %c0_i32_1 = arith.constant 0 : i32
    return %c0_i32, %c0_i32_0 : i32, i32
  }
  func.func @transform_6(%arg0: i32) -> (i32, i32, i32) {
    %c0_i32 = arith.constant 0 : i32
    %c0_i32_0 = arith.constant 0 : i32
    %c0_i32_1 = arith.constant 0 : i32
    return %arg0, %c0_i32, %c0_i32_0 : i32, i32, i32
  }
  func.func @transform_7(%arg0: i32) -> (i32, i32) {
    %c0_i32 = arith.constant 0 : i32
    %c0_i32_0 = arith.constant 0 : i32
    return %arg0, %c0_i32 : i32, i32
  }
  func.func @transform_8(%arg0: i32) -> (i32, i32) {
    %c0_i32 = arith.constant 0 : i32
    %c0_i32_0 = arith.constant 0 : i32
    return %arg0, %c0_i32 : i32, i32
  }
}

</mosaic_0001>

<bundles_post_ra>
// kernel: tpu_custom_call.1
= control target key start
LH: loop header
LB: loop body
LE: loop exit
PB: predicated region body
PF: predicated region fallthrough
CT: control target
= control target key end

     0   :  { %14 = vsyncpa [#allocation3], 0  ;;  %s727_s0 = inlined_call_operand.hbm [shape: f32[8,256], index: 0, kind: input, shape index: {}]   ;;  %s728_s1 = inlined_call_operand.hbm [shape: f32[8,128], index: 1, kind: input, shape index: {}]   ;;  %s729_s2 = inlined_call_operand.hbm [shape: f32[256,256], index: 2, kind: input, shape index: {}]   ;;  %s730_s3 = inlined_call_operand.vmem [shape: f32[1,256], index: 3, kind: input, shape index: {}]   ;;  %s731_s4 = inlined_call_operand.hbm [shape: f32[128,256], index: 4, kind: input, shape index: {}]   ;;  %s732_s5 = inlined_call_operand.vmem [shape: f32[1,256], index: 5, kind: input, shape index: {}]   ;;  %s733_s6 = inlined_call_operand.hbm [shape: f32[1,1,128], index: 6, kind: output, shape index: {0}]   ;;  %s734_s7 = inlined_call_operand.hbm [shape: f32[8,256], index: 7, kind: output, shape index: {1}]   ;;  %s735_s8 = inlined_call_operand.hbm [shape: f32[8,128], index: 8, kind: output, shape index: {2}]  }
   0x1   :  { %15 = vsyncpa [#allocation6], 0 }
   0x2   :  { %16 = vsyncpa [#allocation9], 0 }
   0x3   :  { %17 = vsyncpa [#allocation4], 0  ;;  %s35_s29 = sshll.u32 %s728_s1, 4  ;;  %s36_s29 = int_to_ptr.hbm [resolvable:$true] %s35_s29 }
   0x4   :  { %18 = vsyncpa [#allocation12], 0  ;;  %s636_s30 = smov [#allocation5]   ;;  %s24_s12 = sshll.u32 %s727_s0, 4  ;;  %s25_s12 = int_to_ptr.hbm [resolvable:$true] %s24_s12 }
   0x5   :  { %s37_s9 = sshll.u32 %s636_s30, 4  ;;  %s637_s13 = smov [#allocation2]   ;;  %s38_s9 = int_to_ptr.vmem [resolvable:$true] %s37_s9 }
   0x6   :  { %40 = dma.hbm_to_vmem [thread:$0]  %s36_s29, 128, %s38_s9, [#allocation6]  }
   0x7   :  { %s26_s14 = sshll.u32 %s637_s13, 4  ;;  %s45_s17 = sshll.u32 %s729_s2, 4  ;;  %s27_s14 = int_to_ptr.vmem [resolvable:$true] %s26_s14  ;;  %s46_s17 = int_to_ptr.hbm [resolvable:$true] %s45_s17 }
   0x8   :  { %29 = dma.hbm_to_vmem [thread:$0]  %s25_s12, 256, %s27_s14, [#allocation3]  }
   0x9   :  { %s638_s1 = smov [#allocation7]   ;;  %s60_s21 = sshll.u32 %s731_s4, 4  ;;  %s61_s21 = int_to_ptr.hbm [resolvable:$true] %s60_s21 }
   0xa   :  { %s47_s18 = sshll.u32 %s638_s1, 4  ;;  %s639_s22 = smov 256   ;;  %s48_s18 = int_to_ptr.vmem [resolvable:$true] %s47_s18 }
   0xb   :  { %s640_s0 = smov 16   ;;  %s641_s23 = smov [#allocation8]  }
   0xc   :  { %53 = dma.hbm_to_vmem [thread:$0]  %s46_s17, 8192, %s48_s18, [#allocation6], %s639_s22, %s639_s22, %s640_s0  }
   0xd   :  { %s62_s24 = sshll.u32 %s641_s23, 4  ;;  %s63_s24 = int_to_ptr.vmem [resolvable:$true] %s62_s24 }
   0xe   :  { %68 = dma.hbm_to_vmem [thread:$0]  %s61_s21, 4096, %s63_s24, [#allocation9], %s639_s22, %s639_s22, %s640_s0  }
   0xf   :  { %626 = dma.done.wait [#allocation3], 256  }
  0x10   :  { %627 = vsyncadd [#allocation3], 4294967040 }
  0x11   :  { %628 = dma.done.wait [#allocation6], 8320  }
  0x12   :  { %629 = vsyncadd [#allocation6], 4294958976 }
  0x13   :  { %630 = dma.done.wait [#allocation9], 4096  }
  0x14   :  { %631 = vsyncadd [#allocation9], 4294963200  ;;  %v120_v0 = vld [vmem:[#allocation7 + $0xf8] sm:$0xff]  ;;  %v118_v1 = vld [vmem:[#allocation7 + $0xe8] sm:$0xff]  ;;  %vm356_vm0 = vcmask 7168   ;;  %s403_s29 = sshll.u32 %s734_s7, 4  ;;  %s404_s29 = int_to_ptr.hbm [resolvable:$true] %s403_s29 }
  0x15   :  { %v152_v2 = vld [vmem:[#allocation7 + $0x1f8] sm:$0xff]  ;;  %199 = vmatpush.msra.mxu2 %v120_v0  ;;  %v150_v3 = vld [vmem:[#allocation7 + $0x1e8] sm:$0xff]  ;;  %v119_v4 = vld [vmem:[#allocation7 + $0xf0] sm:$0xff]  ;;  %s643_s30 = smov [#allocation13]   ;;  %s414_s12 = sshll.u32 %s735_s8, 4  ;;  %s415_s12 = int_to_ptr.hbm [resolvable:$true] %s414_s12 }
  0x16   :  { %219 = vmatpush.msra.mxu3 %v152_v2  ;;  %v116_v5 = vld [vmem:[#allocation7 + $0xd8] sm:$0xff]  ;;  %159 = vmatpush.msra.mxu0 %v119_v4  ;;  %v117_v7 = vld [vmem:[#allocation7 + $0xe0] sm:$0xff]  ;;  %v114_v8 = vld [vmem:[#allocation7 + $0xc8] sm:$0xff]  ;;  %s412_s9 = sshll.u32 %s643_s30, 4  ;;  %s392_s16 = sshll.u32 %s733_s6, 4  ;;  %s413_s9 = int_to_ptr.vmem [resolvable:$true] %s412_s9  ;;  %s393_s16 = int_to_ptr.hbm [resolvable:$true] %s392_s16 }
  0x17   :  { %v148_v6 = vld [vmem:[#allocation7 + $0x1d8] sm:$0xff]  ;;  %200 = vmatpush.msra.mxu2 %v118_v1  ;;  %v151_v9 = vld [vmem:[#allocation7 + $0x1f0] sm:$0xff]  ;;  %v146_v10 = vld [vmem:[#allocation7 + $0x1c8] sm:$0xff]  ;;  %s644_s1 = smov [#allocation10]  }
  0x18   :  { %220 = vmatpush.msra.mxu3 %v150_v3  ;;  %160 = vmatpush.msra.mxu0 %v117_v7  ;;  %v115_v11 = vld [vmem:[#allocation7 + $0xd0] sm:$0xff]  ;;  %v149_v12 = vld [vmem:[#allocation7 + $0x1e0] sm:$0xff]  ;;  %v112_v15 = vld [vmem:[#allocation7 + $0xb8] sm:$0xff]  ;;  %s390_s18 = sshll.u32 %s644_s1, 4  ;;  %s391_s18 = int_to_ptr.vmem [resolvable:$true] %s390_s18 }
  0x19   :  { %179 = vmatpush.msra.mxu1 %v151_v9  ;;  %201 = vmatpush.msra.mxu2 %v116_v5  ;;  %v113_v13 = vld [vmem:[#allocation7 + $0xc0] sm:$0xff]  ;;  %v147_v14 = vld [vmem:[#allocation7 + $0x1d0] sm:$0xff]  ;;  %v144_v16 = vld [vmem:[#allocation7 + $0x1b8] sm:$0xff] }
  0x1a   :  { %221 = vmatpush.msra.mxu3 %v148_v6  ;;  %161 = vmatpush.msra.mxu0 %v115_v11  ;;  %v111_v17 = vld [vmem:[#allocation7 + $0xb0] sm:$0xff]  ;;  %v145_v18 = vld [vmem:[#allocation7 + $0x1c0] sm:$0xff]  ;;  %v110_v19 = vld [vmem:[#allocation7 + $0xa8] sm:$0xff] }
  0x1b   :  { %180 = vmatpush.msra.mxu1 %v149_v12  ;;  %202 = vmatpush.msra.mxu2 %v114_v8  ;;  %v142_v20 = vld [vmem:[#allocation7 + $0x1a8] sm:$0xff]  ;;  %v109_v21 = vld [vmem:[#allocation7 + $0xa0] sm:$0xff]  ;;  %v143_v22 = vld [vmem:[#allocation7 + $0x1b0] sm:$0xff] }
  0x1c   :  { %222 = vmatpush.msra.mxu3 %v146_v10  ;;  %162 = vmatpush.msra.mxu0 %v113_v13  ;;  %v108_v23 = vld [vmem:[#allocation7 + $0x98] sm:$0xff]  ;;  %v107_v25 = vld [vmem:[#allocation7 + $0x90] sm:$0xff]  ;;  %v141_v26 = vld [vmem:[#allocation7 + $0x1a0] sm:$0xff] }
  0x1d   :  { %181 = vmatpush.msra.mxu1 %v147_v14  ;;  %203 = vmatpush.msra.mxu2 %v112_v15  ;;  %v140_v24 = vld [vmem:[#allocation7 + $0x198] sm:$0xff]  ;;  %v106_v27 = vld [vmem:[#allocation7 + $0x88] sm:$0xff]  ;;  %v105_v29 = vld [vmem:[#allocation7 + $0x80] sm:$0xff] }
  0x1e   :  { %223 = vmatpush.msra.mxu3 %v144_v16  ;;  %163 = vmatpush.msra.mxu0 %v111_v17  ;;  %v138_v28 = vld [vmem:[#allocation7 + $0x188] sm:$0xff]  ;;  %v139_v30 = vld [vmem:[#allocation7 + $0x190] sm:$0xff]  ;;  %v104_v31 = vld [vmem:[#allocation7 + $0x78] sm:$0xff] }
  0x1f   :  { %182 = vmatpush.msra.mxu1 %v145_v18  ;;  %204 = vmatpush.msra.mxu2 %v110_v19  ;;  %v136_v32 = vld [vmem:[#allocation7 + $0x178] sm:$0xff]  ;;  %v103_v33 = vld [vmem:[#allocation7 + $0x70] sm:$0xff]  ;;  %v137_v34 = vld [vmem:[#allocation7 + $0x180] sm:$0xff] }
  0x20   :  { %224 = vmatpush.msra.mxu3 %v142_v20  ;;  %164 = vmatpush.msra.mxu0 %v109_v21  ;;  %v102_v35 = vld [vmem:[#allocation7 + $0x68] sm:$0xff]  ;;  %v101_v37 = vld [vmem:[#allocation7 + $0x60] sm:$0xff]  ;;  %v135_v38 = vld [vmem:[#allocation7 + $0x170] sm:$0xff] }
  0x21   :  { %183 = vmatpush.msra.mxu1 %v143_v22  ;;  %205 = vmatpush.msra.mxu2 %v108_v23  ;;  %v134_v36 = vld [vmem:[#allocation7 + $0x168] sm:$0xff]  ;;  %v100_v39 = vld [vmem:[#allocation7 + $0x58] sm:$0xff]  ;;  %v99_v41 = vld [vmem:[#allocation7 + $0x50] sm:$0xff] }
  0x22   :  { %225 = vmatpush.msra.mxu3 %v140_v24  ;;  %165 = vmatpush.msra.mxu0 %v107_v25  ;;  %v132_v40 = vld [vmem:[#allocation7 + $0x158] sm:$0xff]  ;;  %v133_v42 = vld [vmem:[#allocation7 + $0x160] sm:$0xff]  ;;  %v98_v43 = vld [vmem:[#allocation7 + $0x48] sm:$0xff] }
  0x23   :  { %184 = vmatpush.msra.mxu1 %v141_v26  ;;  %206 = vmatpush.msra.mxu2 %v106_v27  ;;  %v130_v44 = vld [vmem:[#allocation7 + $0x148] sm:$0xff]  ;;  %v97_v45 = vld [vmem:[#allocation7 + $0x40] sm:$0xff]  ;;  %v131_v46 = vld [vmem:[#allocation7 + $0x150] sm:$0xff] }
  0x24   :  { %226 = vmatpush.msra.mxu3 %v138_v28  ;;  %166 = vmatpush.msra.mxu0 %v105_v29  ;;  %v96_v47 = vld [vmem:[#allocation7 + $0x38] sm:$0xff]  ;;  %v95_v49 = vld [vmem:[#allocation7 + $0x30] sm:$0xff]  ;;  %v129_v50 = vld [vmem:[#allocation7 + $0x140] sm:$0xff] }
  0x25   :  { %185 = vmatpush.msra.mxu1 %v139_v30  ;;  %207 = vmatpush.msra.mxu2 %v104_v31  ;;  %v128_v48 = vld [vmem:[#allocation7 + $0x138] sm:$0xff]  ;;  %v94_v51 = vld [vmem:[#allocation7 + $0x28] sm:$0xff]  ;;  %v93_v53 = vld [vmem:[#allocation7 + $0x20] sm:$0xff] }
  0x26   :  { %227 = vmatpush.msra.mxu3 %v136_v32  ;;  %167 = vmatpush.msra.mxu0 %v103_v33  ;;  %v126_v52 = vld [vmem:[#allocation7 + $0x128] sm:$0xff]  ;;  %v127_v54 = vld [vmem:[#allocation7 + $0x130] sm:$0xff]  ;;  %v92_v55 = vld [vmem:[#allocation7 + $0x18] sm:$0xff] }
  0x27   :  { %186 = vmatpush.msra.mxu1 %v137_v34  ;;  %208 = vmatpush.msra.mxu2 %v102_v35  ;;  %v124_v56 = vld [vmem:[#allocation7 + $0x118] sm:$0xff]  ;;  %v91_v57 = vld [vmem:[#allocation7 + $0x10] sm:$0xff]  ;;  %v125_v58 = vld [vmem:[#allocation7 + $0x120] sm:$0xff] }
  0x28   :  { %228 = vmatpush.msra.mxu3 %v134_v36  ;;  %168 = vmatpush.msra.mxu0 %v101_v37  ;;  %v90_v59 = vld [vmem:[#allocation7 + $0x8] sm:$0xff]  ;;  %v704_v62 = vld [vmem:[#allocation2 + $0x8] sm:$0xff]  ;;  %v89_v63 = vld [vmem:[#allocation7] sm:$0xff] }
  0x29   :  { %187 = vmatpush.msra.mxu1 %v135_v38  ;;  %209 = vmatpush.msra.mxu2 %v100_v39  ;;  %v122_v60 = vld [vmem:[#allocation7 + $0x108] sm:$0xff]  ;;  %v123_v0 = vld [vmem:[#allocation7 + $0x110] sm:$0xff]  ;;  %v121_v1 = vld [vmem:[#allocation7 + $0x100] sm:$0xff] }
  0x2a   :  { %229 = vmatpush.msra.mxu3 %v132_v40  ;;  %169 = vmatpush.msra.mxu0 %v99_v41  ;;  %v702_v61 = vld [vmem:[#allocation2] sm:$0xff]  ;;  %v275_v2 = vld [vmem:[#allocation8 + $0xf0] sm:$0xff]  ;;  %v276_v3 = vld [vmem:[#allocation8 + $0xf8] sm:$0xff] }
  0x2b   :  { %188 = vmatpush.msra.mxu1 %v133_v42  ;;  %210 = vmatpush.msra.mxu2 %v98_v43  ;;  %v273_v4 = vld [vmem:[#allocation8 + $0xe0] sm:$0xff]  ;;  %v274_v5 = vld [vmem:[#allocation8 + $0xe8] sm:$0xff]  ;;  %v271_v6 = vld [vmem:[#allocation8 + $0xd0] sm:$0xff] }
  0x2c   :  { %230 = vmatpush.msra.mxu3 %v130_v44  ;;  %170 = vmatpush.msra.mxu0 %v97_v45  ;;  %v272_v7 = vld [vmem:[#allocation8 + $0xd8] sm:$0xff]  ;;  %v269_v8 = vld [vmem:[#allocation8 + $0xc0] sm:$0xff]  ;;  %v270_v9 = vld [vmem:[#allocation8 + $0xc8] sm:$0xff] }
  0x2d   :  { %189 = vmatpush.msra.mxu1 %v131_v46  ;;  %211 = vmatpush.msra.mxu2 %v96_v47  ;;  %v267_v10 = vld [vmem:[#allocation8 + $0xb0] sm:$0xff]  ;;  %v268_v11 = vld [vmem:[#allocation8 + $0xb8] sm:$0xff]  ;;  %v265_v12 = vld [vmem:[#allocation8 + $0xa0] sm:$0xff] }
  0x2e   :  { %231 = vmatpush.msra.mxu3 %v128_v48  ;;  %171 = vmatpush.msra.mxu0 %v95_v49  ;;  %v266_v13 = vld [vmem:[#allocation8 + $0xa8] sm:$0xff]  ;;  %v263_v14 = vld [vmem:[#allocation8 + $0x90] sm:$0xff]  ;;  %v264_v15 = vld [vmem:[#allocation8 + $0x98] sm:$0xff] }
  0x2f   :  { %190 = vmatpush.msra.mxu1 %v129_v50  ;;  %212 = vmatpush.msra.mxu2 %v94_v51  ;;  %v261_v16 = vld [vmem:[#allocation8 + $0x80] sm:$0xff]  ;;  %v262_v17 = vld [vmem:[#allocation8 + $0x88] sm:$0xff]  ;;  %v259_v18 = vld [vmem:[#allocation8 + $0x70] sm:$0xff] }
  0x30   :  { %232 = vmatpush.msra.mxu3 %v126_v52  ;;  %172 = vmatpush.msra.mxu0 %v93_v53  ;;  %v260_v19 = vld [vmem:[#allocation8 + $0x78] sm:$0xff]  ;;  %v257_v20 = vld [vmem:[#allocation8 + $0x60] sm:$0xff]  ;;  %v258_v21 = vld [vmem:[#allocation8 + $0x68] sm:$0xff] }
  0x31   :  { %191 = vmatpush.msra.mxu1 %v127_v54  ;;  %213 = vmatpush.msra.mxu2 %v92_v55  ;;  %v255_v22 = vld [vmem:[#allocation8 + $0x50] sm:$0xff]  ;;  %v256_v23 = vld [vmem:[#allocation8 + $0x58] sm:$0xff]  ;;  %v253_v24 = vld [vmem:[#allocation8 + $0x40] sm:$0xff] }
  0x32   :  { %233 = vmatpush.msra.mxu3 %v124_v56  ;;  %173 = vmatpush.msra.mxu0 %v91_v57  ;;  %v254_v25 = vld [vmem:[#allocation8 + $0x48] sm:$0xff]  ;;  %v251_v26 = vld [vmem:[#allocation8 + $0x30] sm:$0xff]  ;;  %v252_v27 = vld [vmem:[#allocation8 + $0x38] sm:$0xff] }
  0x33   :  { %192 = vmatpush.msra.mxu1 %v125_v58  ;;  %214 = vmatpush.msra.mxu2 %v90_v59  ;;  %v249_v28 = vld [vmem:[#allocation8 + $0x20] sm:$0xff]  ;;  %v250_v29 = vld [vmem:[#allocation8 + $0x28] sm:$0xff]  ;;  %v247_v30 = vld [vmem:[#allocation8 + $0x10] sm:$0xff] }
  0x34   :  { %234 = vmatpush.msra.mxu3 %v122_v60  ;;  %215 = vmatmul.f32.vlgmr.msra.gmra.mxu2 %v702_v61  ;;  %v248_v31 = vld [vmem:[#allocation8 + $0x18] sm:$0xff]  ;;  %v245_v32 = vld [vmem:[#allocation8] sm:$0xff]  ;;  %v246_v33 = vld [vmem:[#allocation8 + $0x8] sm:$0xff] }
  0x35   :  { %235 = vmatmul.f32.vlgmr.msra.gmra.mxu3 %v704_v62  ;;  %174 = vmatpush.msra.mxu0 %v89_v63  ;;  %v153_v34 = vld [vmem:[%s730_s3] sm:$0x3]  ;;  %v242_v50 = vld [vmem:[#allocation5] sm:$0xff] }
  0x36   :  { %193 = vmatpush.msra.mxu1 %v123_v0  ;;  %175 = vmatmul.f32.vlgmr.msra.gmra.mxu0 %v702_v61  ;;  %v155_v35 = vperm.slane %v153_v34, 0  ;;  %v156_v38 = vperm.slane %v153_v34, 1  ;;  %v277_v56 = vld [vmem:[%s732_s5] sm:$0x3]  ;;  %s642_s5 = smov [#allocation11]  }
  0x37   :  { %283 = vmatpush.msrb.mxu0 %v275_v2  ;;  %v279_v57 = vperm.slane %v277_v56, 0  ;;  %v280_v58 = vperm.slane %v277_v56, 1  ;;  %s401_s26 = sshll.u32 %s642_s5, 4  ;;  %s402_s26 = int_to_ptr.vmem [resolvable:$true] %s401_s26 }
  0x38   :  { %194 = vmatpush.msra.mxu1 %v121_v1 }
  0x39   :  { %195 = vmatmul.f32.vlgmr.msra.gmra.mxu1 %v704_v62  ;;  %284 = vmatpush.msrb.mxu0 %v273_v4 }
  0x3a   :  { %303 = vmatpush.msrb.mxu1 %v276_v3 }
  0x3b   :  { %285 = vmatpush.msrb.mxu0 %v271_v6 }
  0x3c   :  { %304 = vmatpush.msrb.mxu1 %v274_v5 }
  0x3d   :  { %286 = vmatpush.msrb.mxu0 %v269_v8 }
  0x3e   :  { %305 = vmatpush.msrb.mxu1 %v272_v7 }
  0x3f   :  { %287 = vmatpush.msrb.mxu0 %v267_v10 }
  0x40   :  { %306 = vmatpush.msrb.mxu1 %v270_v9 }
  0x41   :  { %288 = vmatpush.msrb.mxu0 %v265_v12 }
  0x42   :  { %307 = vmatpush.msrb.mxu1 %v268_v11 }
  0x43   :  { %289 = vmatpush.msrb.mxu0 %v263_v14 }
  0x44   :  { %308 = vmatpush.msrb.mxu1 %v266_v13 }
  0x45   :  { %290 = vmatpush.msrb.mxu0 %v261_v16 }
  0x46   :  { %309 = vmatpush.msrb.mxu1 %v264_v15 }
  0x47   :  { %291 = vmatpush.msrb.mxu0 %v259_v18 }
  0x48   :  { %310 = vmatpush.msrb.mxu1 %v262_v17 }
  0x49   :  { %292 = vmatpush.msrb.mxu0 %v257_v20 }
  0x4a   :  { %311 = vmatpush.msrb.mxu1 %v260_v19 }
  0x4b   :  { %293 = vmatpush.msrb.mxu0 %v255_v22 }
  0x4c   :  { %312 = vmatpush.msrb.mxu1 %v258_v21 }
  0x4d   :  { %294 = vmatpush.msrb.mxu0 %v253_v24 }
  0x4e   :  { %313 = vmatpush.msrb.mxu1 %v256_v23 }
  0x4f   :  { %295 = vmatpush.msrb.mxu0 %v251_v26 }
  0x50   :  { %314 = vmatpush.msrb.mxu1 %v254_v25 }
  0x51   :  { %296 = vmatpush.msrb.mxu0 %v249_v28 }
  0x52   :  { %315 = vmatpush.msrb.mxu1 %v252_v27 }
  0x53   :  { %297 = vmatpush.msrb.mxu0 %v247_v30 }
  0x54   :  { %316 = vmatpush.msrb.mxu1 %v250_v29 }
  0x55   :  { %298 = vmatpush.msrb.mxu0 %v245_v32 }
  0x56   :  { %317 = vmatpush.msrb.mxu1 %v248_v31 }
  0x58   :  { %318 = vmatpush.msrb.mxu1 %v246_v33 }
  0xb3   :  { %v176_v36 = vpop.f32.mrf.mxu0 }
  0xb4   :  { %v177_v37 = vadd.f32 %v176_v36, %v155_v35 }
  0xb6   :  { %v196_v39 = vpop.f32.mrf.mxu1 }
  0xb7   :  { %v197_v40 = vadd.f32 %v196_v39, %v177_v37  ;;  %v216_v41 = vpop.f32.mrf.mxu2 }
  0xb8   :  { %v236_v42 = vpop.f32.mrf.mxu3  ;;  %v217_v43 = vadd.f32 %v216_v41, %v156_v38 }
  0xb9   :  { %v347_v44 = vmul.f32 %v197_v40, %v197_v40 }
  0xba   :  { %v237_v45 = vadd.f32 %v236_v42, %v217_v43 }
  0xbc   :  { %v239_v46 = vmul.f32 0.5, %v237_v45  ;;  %v346_v47 = vadd.f32 1.0, %v237_v45 }
  0xbe   :  { %v240_v48 = vmul.f32 1.442695, %v239_v46  ;;  %v348_v49 = vsub.f32 %v346_v47, %v347_v44 }
  0xc0   :  { %448 = vpow2.f32 %v240_v48 }
  0xc6   :  { %v449_v51 = vpop.eup %448 }
  0xc7   :  { %v243_v52 = vmul.f32 %v449_v51, %v242_v50  ;;  %v345_v53 = vmul.f32 %v449_v51, %v449_v51 }
  0xc9   :  { %v244_v54 = vadd.f32 %v243_v52, %v197_v40  ;;  %v349_v55 = vsub.f32 %v348_v49, %v345_v53 }
  0xcb   :  { %299 = vmatmul.f32.vlgmr.msrb.gmra.mxu0 %v244_v54  ;;  %384 = vst [vmem:[#allocation13] sm:$0xff] %v244_v54  ;;  %319 = vmatmul.f32.vlgmr.msrb.gmra.mxu1 %v244_v54  ;;  %v350_v24 = vmul.f32 -0.5, %v349_v55 }
 0x148   :  { %v300_v59 = vpop.f32.mrf.mxu0  ;;  %v320_v60 = vpop.f32.mrf.mxu1 }
 0x149   :  { %v301_v63 = vadd.f32 %v300_v59, %v279_v57  ;;  %v321_v0 = vadd.f32 %v320_v60, %v280_v58 }
 0x14b   :  { %v329_v1 = vand.u32 2147483647, %v301_v63  ;;  %382 = vst [vmem:[#allocation11] sm:$0xff] %v301_v63  ;;  %v330_v2 = vand.u32 2147483647, %v321_v0  ;;  %v323_v11 = vmax.f32 %v301_v63, 0.0  ;;  %v325_v12 = vmul.f32 %v301_v63, %v702_v61 }
 0x14c   :  { %383 = vst [vmem:[#allocation11 + $0x8] sm:$0xff] %v321_v0  ;;  %v324_v13 = vmax.f32 %v321_v0, 0.0  ;;  %v326_v14 = vmul.f32 %v321_v0, %v704_v62 }
 0x14d   :  { %v331_v3 = vsub.f32 0.0, %v329_v1  ;;  %v332_v4 = vsub.f32 0.0, %v330_v2  ;;  %v327_v17 = vsub.f32 %v323_v11, %v325_v12  ;;  %406 = dma.vmem_to_hbm [thread:$0]  %s402_s26, 256, %s404_s29, [#allocation12]  }
 0x14e   :  { %v328_v19 = vsub.f32 %v324_v13, %v326_v14  ;;  %417 = dma.vmem_to_hbm [thread:$0]  %s413_s9, 128, %s415_s12, [#allocation12]  }
 0x14f   :  { %v333_v5 = vmul.f32 1.442695, %v331_v3  ;;  %v335_v6 = vmul.f32 1.442695, %v332_v4 }
 0x151   :  { %450 = vpow2.f32 %v333_v5 }
 0x152   :  { %452 = vpow2.f32 %v335_v6 }
 0x157   :  { %v451_v7 = vpop.eup %450 }
 0x158   :  { %v453_v8 = vpop.eup %452  ;;  %v337_v9 = vadd.f32 1.0, %v451_v7 }
 0x159   :  { %v338_v10 = vadd.f32 1.0, %v453_v8 }
 0x15a   :  { %454 = vlog2.f32 %v337_v9 }
 0x15b   :  { %456 = vlog2.f32 %v338_v10 }
 0x160   :  { %v455_v15 = vpop.eup %454 }
 0x161   :  { %v457_v16 = vpop.eup %456  ;;  %v340_v18 = vmul.f32 0.6931472, %v455_v15 }
 0x162   :  { %v342_v20 = vmul.f32 0.6931472, %v457_v16 }
 0x163   :  { %v343_v21 = vadd.f32 %v340_v18, %v327_v17 }
 0x164   :  { %v344_v22 = vadd.f32 %v342_v20, %v328_v19 }
 0x166   :  { %v351_v23 = vadd.f32 %v344_v22, %v343_v21 }
 0x168   :  { %352 = vadd.xlane.f32.xlu0 %v351_v23 }
 0x170   :  { %354 = vadd.xlane.f32.xlu0 %v350_v24 }
 0x1db   :  { %v353_v25 = vpop.xlane.xlu0 %352 }
 0x1dc   :  { %v357_v26 = vsel %vm356_vm0, %v353_v25, 0.0 }
 0x1dd   :  { %358 = vadd.xlane.f32.xlu1 %v357_v26 }
 0x1e3   :  { %v355_v61 = vpop.xlane.xlu0 %354 }
 0x1e4   :  { %v367_v27 = vsel %vm356_vm0, %v355_v61, 0.0 }
 0x1e5   :  { %368 = vadd.xlane.f32.xlu1 %v367_v27 }
 0x250   :  { %v359_v62 = vpop.xlane.xlu1 %358 }
 0x251   :  { %v360_v28 = vrot.slane %v359_v62, 4 }
 0x253   :  { %v361_v29 = vadd.f32 %v360_v28, %v359_v62 }
 0x255   :  { %v362_v30 = vrot.slane %v361_v29, 2 }
 0x257   :  { %v363_v31 = vadd.f32 %v362_v30, %v361_v29 }
 0x258   :  { %v369_v32 = vpop.xlane.xlu1 %368 }
 0x259   :  { %v370_v33 = vrot.slane %v369_v32, 4  ;;  %v364_v34 = vrot.slane %v363_v31, 1 }
 0x25b   :  { %v371_v35 = vadd.f32 %v370_v33, %v369_v32  ;;  %v365_v36 = vadd.f32 %v364_v34, %v363_v31 }
 0x25d   :  { %v372_v37 = vrot.slane %v371_v35, 2  ;;  %435 = vpush %v365_v36 }
 0x25f   :  { %v373_v38 = vadd.f32 %v372_v37, %v371_v35 }
 0x261   :  { %v374_v39 = vrot.slane %v373_v38, 1 }
 0x263   :  { %v375_v40 = vadd.f32 %v374_v39, %v373_v38 }
 0x265   :  { %437 = vpush %v375_v40 }
 0x28e   :  { %s436_s7 = spop %435 }
 0x296   :  { %s438_s8 = spop %437 }
 0x297   :  { %s377_s13 = smul.f32 4.0, %s438_s8 }
 0x299   :  { %s378_s17 = sadd.f32 %s436_s7, %s377_s13 }
 0x29b   :  { %s379_s19 = smul.f32 0.125, %s378_s17 }
 0x29d   :  { %v380_v41 = vstv %s379_s19 }
 0x29e   :  { %381 = vst [vmem:[#allocation10] sm:$0x1] %v380_v41 }
 0x29f   :  { %395 = dma.vmem_to_hbm [thread:$0]  %s391_s18, 16, %s393_s16, [#allocation4]  }
 0x2a0   :  { %632 = dma.done.wait [#allocation4], 16  }
 0x2a1   :  { %633 = vsyncadd [#allocation4], 4294967280 }
 0x2a2   :  { %634 = dma.done.wait [#allocation12], 384  }
 0x2a3   :  { %635 = vsyncadd [#allocation12], 4294966912 }
 0x2a4   :  { %430 = vsyncpa [#allocation3], 1 }
 0x2a5   :  { %431 = vsyncpa [#allocation6], 1 }
 0x2a6   :  { %432 = vsyncpa [#allocation9], 1 }
 0x2a7   :  { %433 = vsyncpa [#allocation4], 1 }
 0x2a8   :  { %434 = vsyncpa [#allocation12], 1 }

// kernel: tpu_custom_call.1
= control target key start
LH: loop header
LB: loop body
LE: loop exit
PB: predicated region body
PF: predicated region fallthrough
CT: control target
= control target key end

     0   :  { %14 = vsyncpa [#allocation3], 0  ;;  %s727_s0 = inlined_call_operand.hbm [shape: f32[8,256], index: 0, kind: input, shape index: {}]   ;;  %s728_s1 = inlined_call_operand.hbm [shape: f32[8,128], index: 1, kind: input, shape index: {}]   ;;  %s729_s2 = inlined_call_operand.hbm [shape: f32[256,256], index: 2, kind: input, shape index: {}]   ;;  %s730_s3 = inlined_call_operand.vmem [shape: f32[1,256], index: 3, kind: input, shape index: {}]   ;;  %s731_s4 = inlined_call_operand.hbm [shape: f32[128,256], index: 4, kind: input, shape index: {}]   ;;  %s732_s5 = inlined_call_operand.vmem [shape: f32[1,256], index: 5, kind: input, shape index: {}]   ;;  %s733_s6 = inlined_call_operand.hbm [shape: f32[1,1,128], index: 6, kind: output, shape index: {0}]   ;;  %s734_s7 = inlined_call_operand.hbm [shape: f32[8,256], index: 7, kind: output, shape index: {1}]   ;;  %s735_s8 = inlined_call_operand.hbm [shape: f32[8,128], index: 8, kind: output, shape index: {2}]  }
   0x1   :  { %15 = vsyncpa [#allocation6], 0 }
   0x2   :  { %16 = vsyncpa [#allocation9], 0 }
   0x3   :  { %17 = vsyncpa [#allocation4], 0  ;;  %s35_s29 = sshll.u32 %s728_s1, 4  ;;  %s36_s29 = int_to_ptr.hbm [resolvable:$true] %s35_s29 }
   0x4   :  { %18 = vsyncpa [#allocation12], 0  ;;  %s636_s30 = smov [#allocation5]   ;;  %s24_s12 = sshll.u32 %s727_s0, 4  ;;  %s25_s12 = int_to_ptr.hbm [resolvable:$true] %s24_s12 }
   0x5   :  { %s37_s9 = sshll.u32 %s636_s30, 4  ;;  %s637_s13 = smov [#allocation2]   ;;  %s38_s9 = int_to_ptr.vmem [resolvable:$true] %s37_s9 }
   0x6   :  { %40 = dma.hbm_to_vmem [thread:$0]  %s36_s29, 128, %s38_s9, [#allocation6]  }
   0x7   :  { %s26_s14 = sshll.u32 %s637_s13, 4  ;;  %s45_s17 = sshll.u32 %s729_s2, 4  ;;  %s27_s14 = int_to_ptr.vmem [resolvable:$true] %s26_s14  ;;  %s46_s17 = int_to_ptr.hbm [resolvable:$true] %s45_s17 }
   0x8   :  { %29 = dma.hbm_to_vmem [thread:$0]  %s25_s12, 256, %s27_s14, [#allocation3]  }
   0x9   :  { %s638_s1 = smov [#allocation7]   ;;  %s60_s21 = sshll.u32 %s731_s4, 4  ;;  %s61_s21 = int_to_ptr.hbm [resolvable:$true] %s60_s21 }
   0xa   :  { %s47_s18 = sshll.u32 %s638_s1, 4  ;;  %s639_s22 = smov 256   ;;  %s48_s18 = int_to_ptr.vmem [resolvable:$true] %s47_s18 }
   0xb   :  { %s640_s0 = smov 16   ;;  %s641_s23 = smov [#allocation8]  }
   0xc   :  { %53 = dma.hbm_to_vmem [thread:$0]  %s46_s17, 8192, %s48_s18, [#allocation6], %s639_s22, %s639_s22, %s640_s0  }
   0xd   :  { %s62_s24 = sshll.u32 %s641_s23, 4  ;;  %s63_s24 = int_to_ptr.vmem [resolvable:$true] %s62_s24 }
   0xe   :  { %68 = dma.hbm_to_vmem [thread:$0]  %s61_s21, 4096, %s63_s24, [#allocation9], %s639_s22, %s639_s22, %s640_s0  }
   0xf   :  { %626 = dma.done.wait [#allocation3], 256  }
  0x10   :  { %627 = vsyncadd [#allocation3], 4294967040 }
  0x11   :  { %628 = dma.done.wait [#allocation6], 8320  }
  0x12   :  { %629 = vsyncadd [#allocation6], 4294958976 }
  0x13   :  { %630 = dma.done.wait [#allocation9], 4096  }
  0x14   :  { %631 = vsyncadd [#allocation9], 4294963200  ;;  %v120_v0 = vld [vmem:[#allocation7 + $0xf8] sm:$0xff]  ;;  %v118_v1 = vld [vmem:[#allocation7 + $0xe8] sm:$0xff]  ;;  %vm356_vm0 = vcmask 7168   ;;  %s403_s29 = sshll.u32 %s734_s7, 4  ;;  %s404_s29 = int_to_ptr.hbm [resolvable:$true] %s403_s29 }
  0x15   :  { %v152_v2 = vld [vmem:[#allocation7 + $0x1f8] sm:$0xff]  ;;  %199 = vmatpush.msra.mxu2 %v120_v0  ;;  %v150_v3 = vld [vmem:[#allocation7 + $0x1e8] sm:$0xff]  ;;  %v119_v4 = vld [vmem:[#allocation7 + $0xf0] sm:$0xff]  ;;  %s643_s30 = smov [#allocation13]   ;;  %s414_s12 = sshll.u32 %s735_s8, 4  ;;  %s415_s12 = int_to_ptr.hbm [resolvable:$true] %s414_s12 }
  0x16   :  { %219 = vmatpush.msra.mxu3 %v152_v2  ;;  %v116_v5 = vld [vmem:[#allocation7 + $0xd8] sm:$0xff]  ;;  %159 = vmatpush.msra.mxu0 %v119_v4  ;;  %v117_v7 = vld [vmem:[#allocation7 + $0xe0] sm:$0xff]  ;;  %v114_v8 = vld [vmem:[#allocation7 + $0xc8] sm:$0xff]  ;;  %s412_s9 = sshll.u32 %s643_s30, 4  ;;  %s392_s16 = sshll.u32 %s733_s6, 4  ;;  %s413_s9 = int_to_ptr.vmem [resolvable:$true] %s412_s9  ;;  %s393_s16 = int_to_ptr.hbm [resolvable:$true] %s392_s16 }
  0x17   :  { %v148_v6 = vld [vmem:[#allocation7 + $0x1d8] sm:$0xff]  ;;  %200 = vmatpush.msra.mxu2 %v118_v1  ;;  %v151_v9 = vld [vmem:[#allocation7 + $0x1f0] sm:$0xff]  ;;  %v146_v10 = vld [vmem:[#allocation7 + $0x1c8] sm:$0xff]  ;;  %s644_s1 = smov [#allocation10]  }
  0x18   :  { %220 = vmatpush.msra.mxu3 %v150_v3  ;;  %160 = vmatpush.msra.mxu0 %v117_v7  ;;  %v115_v11 = vld [vmem:[#allocation7 + $0xd0] sm:$0xff]  ;;  %v149_v12 = vld [vmem:[#allocation7 + $0x1e0] sm:$0xff]  ;;  %v112_v15 = vld [vmem:[#allocation7 + $0xb8] sm:$0xff]  ;;  %s390_s18 = sshll.u32 %s644_s1, 4  ;;  %s391_s18 = int_to_ptr.vmem [resolvable:$true] %s390_s18 }
  0x19   :  { %179 = vmatpush.msra.mxu1 %v151_v9  ;;  %201 = vmatpush.msra.mxu2 %v116_v5  ;;  %v113_v13 = vld [vmem:[#allocation7 + $0xc0] sm:$0xff]  ;;  %v147_v14 = vld [vmem:[#allocation7 + $0x1d0] sm:$0xff]  ;;  %v144_v16 = vld [vmem:[#allocation7 + $0x1b8] sm:$0xff] }
  0x1a   :  { %221 = vmatpush.msra.mxu3 %v148_v6  ;;  %161 = vmatpush.msra.mxu0 %v115_v11  ;;  %v111_v17 = vld [vmem:[#allocation7 + $0xb0] sm:$0xff]  ;;  %v145_v18 = vld [vmem:[#allocation7 + $0x1c0] sm:$0xff]  ;;  %v110_v19 = vld [vmem:[#allocation7 + $0xa8] sm:$0xff] }
  0x1b   :  { %180 = vmatpush.msra.mxu1 %v149_v12  ;;  %202 = vmatpush.msra.mxu2 %v114_v8  ;;  %v142_v20 = vld [vmem:[#allocation7 + $0x1a8] sm:$0xff]  ;;  %v109_v21 = vld [vmem:[#allocation7 + $0xa0] sm:$0xff]  ;;  %v143_v22 = vld [vmem:[#allocation7 + $0x1b0] sm:$0xff] }
  0x1c   :  { %222 = vmatpush.msra.mxu3 %v146_v10  ;;  %162 = vmatpush.msra.mxu0 %v113_v13  ;;  %v108_v23 = vld [vmem:[#allocation7 + $0x98] sm:$0xff]  ;;  %v107_v25 = vld [vmem:[#allocation7 + $0x90] sm:$0xff]  ;;  %v141_v26 = vld [vmem:[#allocation7 + $0x1a0] sm:$0xff] }
  0x1d   :  { %181 = vmatpush.msra.mxu1 %v147_v14  ;;  %203 = vmatpush.msra.mxu2 %v112_v15  ;;  %v140_v24 = vld [vmem:[#allocation7 + $0x198] sm:$0xff]  ;;  %v106_v27 = vld [vmem:[#allocation7 + $0x88] sm:$0xff]  ;;  %v105_v29 = vld [vmem:[#allocation7 + $0x80] sm:$0xff] }
  0x1e   :  { %223 = vmatpush.msra.mxu3 %v144_v16  ;;  %163 = vmatpush.msra.mxu0 %v111_v17  ;;  %v138_v28 = vld [vmem:[#allocation7 + $0x188] sm:$0xff]  ;;  %v139_v30 = vld [vmem:[#allocation7 + $0x190] sm:$0xff]  ;;  %v104_v31 = vld [vmem:[#allocation7 + $0x78] sm:$0xff] }
  0x1f   :  { %182 = vmatpush.msra.mxu1 %v145_v18  ;;  %204 = vmatpush.msra.mxu2 %v110_v19  ;;  %v136_v32 = vld [vmem:[#allocation7 + $0x178] sm:$0xff]  ;;  %v103_v33 = vld [vmem:[#allocation7 + $0x70] sm:$0xff]  ;;  %v137_v34 = vld [vmem:[#allocation7 + $0x180] sm:$0xff] }
  0x20   :  { %224 = vmatpush.msra.mxu3 %v142_v20  ;;  %164 = vmatpush.msra.mxu0 %v109_v21  ;;  %v102_v35 = vld [vmem:[#allocation7 + $0x68] sm:$0xff]  ;;  %v101_v37 = vld [vmem:[#allocation7 + $0x60] sm:$0xff]  ;;  %v135_v38 = vld [vmem:[#allocation7 + $0x170] sm:$0xff] }
  0x21   :  { %183 = vmatpush.msra.mxu1 %v143_v22  ;;  %205 = vmatpush.msra.mxu2 %v108_v23  ;;  %v134_v36 = vld [vmem:[#allocation7 + $0x168] sm:$0xff]  ;;  %v100_v39 = vld [vmem:[#allocation7 + $0x58] sm:$0xff]  ;;  %v99_v41 = vld [vmem:[#allocation7 + $0x50] sm:$0xff] }
  0x22   :  { %225 = vmatpush.msra.mxu3 %v140_v24  ;;  %165 = vmatpush.msra.mxu0 %v107_v25  ;;  %v132_v40 = vld [vmem:[#allocation7 + $0x158] sm:$0xff]  ;;  %v133_v42 = vld [vmem:[#allocation7 + $0x160] sm:$0xff]  ;;  %v98_v43 = vld [vmem:[#allocation7 + $0x48] sm:$0xff] }
  0x23   :  { %184 = vmatpush.msra.mxu1 %v141_v26  ;;  %206 = vmatpush.msra.mxu2 %v106_v27  ;;  %v130_v44 = vld [vmem:[#allocation7 + $0x148] sm:$0xff]  ;;  %v97_v45 = vld [vmem:[#allocation7 + $0x40] sm:$0xff]  ;;  %v131_v46 = vld [vmem:[#allocation7 + $0x150] sm:$0xff] }
  0x24   :  { %226 = vmatpush.msra.mxu3 %v138_v28  ;;  %166 = vmatpush.msra.mxu0 %v105_v29  ;;  %v96_v47 = vld [vmem:[#allocation7 + $0x38] sm:$0xff]  ;;  %v95_v49 = vld [vmem:[#allocation7 + $0x30] sm:$0xff]  ;;  %v129_v50 = vld [vmem:[#allocation7 + $0x140] sm:$0xff] }
  0x25   :  { %185 = vmatpush.msra.mxu1 %v139_v30  ;;  %207 = vmatpush.msra.mxu2 %v104_v31  ;;  %v128_v48 = vld [vmem:[#allocation7 + $0x138] sm:$0xff]  ;;  %v94_v51 = vld [vmem:[#allocation7 + $0x28] sm:$0xff]  ;;  %v93_v53 = vld [vmem:[#allocation7 + $0x20] sm:$0xff] }
  0x26   :  { %227 = vmatpush.msra.mxu3 %v136_v32  ;;  %167 = vmatpush.msra.mxu0 %v103_v33  ;;  %v126_v52 = vld [vmem:[#allocation7 + $0x128] sm:$0xff]  ;;  %v127_v54 = vld [vmem:[#allocation7 + $0x130] sm:$0xff]  ;;  %v92_v55 = vld [vmem:[#allocation7 + $0x18] sm:$0xff] }
  0x27   :  { %186 = vmatpush.msra.mxu1 %v137_v34  ;;  %208 = vmatpush.msra.mxu2 %v102_v35  ;;  %v124_v56 = vld [vmem:[#allocation7 + $0x118] sm:$0xff]  ;;  %v91_v57 = vld [vmem:[#allocation7 + $0x10] sm:$0xff]  ;;  %v125_v58 = vld [vmem:[#allocation7 + $0x120] sm:$0xff] }
  0x28   :  { %228 = vmatpush.msra.mxu3 %v134_v36  ;;  %168 = vmatpush.msra.mxu0 %v101_v37  ;;  %v90_v59 = vld [vmem:[#allocation7 + $0x8] sm:$0xff]  ;;  %v704_v62 = vld [vmem:[#allocation2 + $0x8] sm:$0xff]  ;;  %v89_v63 = vld [vmem:[#allocation7] sm:$0xff] }
  0x29   :  { %187 = vmatpush.msra.mxu1 %v135_v38  ;;  %209 = vmatpush.msra.mxu2 %v100_v39  ;;  %v122_v60 = vld [vmem:[#allocation7 + $0x108] sm:$0xff]  ;;  %v123_v0 = vld [vmem:[#allocation7 + $0x110] sm:$0xff]  ;;  %v121_v1 = vld [vmem:[#allocation7 + $0x100] sm:$0xff] }
  0x2a   :  { %229 = vmatpush.msra.mxu3 %v132_v40  ;;  %169 = vmatpush.msra.mxu0 %v99_v41  ;;  %v702_v61 = vld [vmem:[#allocation2] sm:$0xff]  ;;  %v275_v2 = vld [vmem:[#allocation8 + $0xf0] sm:$0xff]  ;;  %v276_v3 = vld [vmem:[#allocation8 + $0xf8] sm:$0xff] }
  0x2b   :  { %188 = vmatpush.msra.mxu1 %v133_v42  ;;  %210 = vmatpush.msra.mxu2 %v98_v43  ;;  %v273_v4 = vld [vmem:[#allocation8 + $0xe0] sm:$0xff]  ;;  %v274_v5 = vld [vmem:[#allocation8 + $0xe8] sm:$0xff]  ;;  %v271_v6 = vld [vmem:[#allocation8 + $0xd0] sm:$0xff] }
  0x2c   :  { %230 = vmatpush.msra.mxu3 %v130_v44  ;;  %170 = vmatpush.msra.mxu0 %v97_v45  ;;  %v272_v7 = vld [vmem:[#allocation8 + $0xd8] sm:$0xff]  ;;  %v269_v8 = vld [vmem:[#allocation8 + $0xc0] sm:$0xff]  ;;  %v270_v9 = vld [vmem:[#allocation8 + $0xc8] sm:$0xff] }
  0x2d   :  { %189 = vmatpush.msra.mxu1 %v131_v46  ;;  %211 = vmatpush.msra.mxu2 %v96_v47  ;;  %v267_v10 = vld [vmem:[#allocation8 + $0xb0] sm:$0xff]  ;;  %v268_v11 = vld [vmem:[#allocation8 + $0xb8] sm:$0xff]  ;;  %v265_v12 = vld [vmem:[#allocation8 + $0xa0] sm:$0xff] }
  0x2e   :  { %231 = vmatpush.msra.mxu3 %v128_v48  ;;  %171 = vmatpush.msra.mxu0 %v95_v49  ;;  %v266_v13 = vld [vmem:[#allocation8 + $0xa8] sm:$0xff]  ;;  %v263_v14 = vld [vmem:[#allocation8 + $0x90] sm:$0xff]  ;;  %v264_v15 = vld [vmem:[#allocation8 + $0x98] sm:$0xff] }
  0x2f   :  { %190 = vmatpush.msra.mxu1 %v129_v50  ;;  %212 = vmatpush.msra.mxu2 %v94_v51  ;;  %v261_v16 = vld [vmem:[#allocation8 + $0x80] sm:$0xff]  ;;  %v262_v17 = vld [vmem:[#allocation8 + $0x88] sm:$0xff]  ;;  %v259_v18 = vld [vmem:[#allocation8 + $0x70] sm:$0xff] }
  0x30   :  { %232 = vmatpush.msra.mxu3 %v126_v52  ;;  %172 = vmatpush.msra.mxu0 %v93_v53  ;;  %v260_v19 = vld [vmem:[#allocation8 + $0x78] sm:$0xff]  ;;  %v257_v20 = vld [vmem:[#allocation8 + $0x60] sm:$0xff]  ;;  %v258_v21 = vld [vmem:[#allocation8 + $0x68] sm:$0xff] }
  0x31   :  { %191 = vmatpush.msra.mxu1 %v127_v54  ;;  %213 = vmatpush.msra.mxu2 %v92_v55  ;;  %v255_v22 = vld [vmem:[#allocation8 + $0x50] sm:$0xff]  ;;  %v256_v23 = vld [vmem:[#allocation8 + $0x58] sm:$0xff]  ;;  %v253_v24 = vld [vmem:[#allocation8 + $0x40] sm:$0xff] }
  0x32   :  { %233 = vmatpush.msra.mxu3 %v124_v56  ;;  %173 = vmatpush.msra.mxu0 %v91_v57  ;;  %v254_v25 = vld [vmem:[#allocation8 + $0x48] sm:$0xff]  ;;  %v251_v26 = vld [vmem:[#allocation8 + $0x30] sm:$0xff]  ;;  %v252_v27 = vld [vmem:[#allocation8 + $0x38] sm:$0xff] }
  0x33   :  { %192 = vmatpush.msra.mxu1 %v125_v58  ;;  %214 = vmatpush.msra.mxu2 %v90_v59  ;;  %v249_v28 = vld [vmem:[#allocation8 + $0x20] sm:$0xff]  ;;  %v250_v29 = vld [vmem:[#allocation8 + $0x28] sm:$0xff]  ;;  %v247_v30 = vld [vmem:[#allocation8 + $0x10] sm:$0xff] }
  0x34   :  { %234 = vmatpush.msra.mxu3 %v122_v60  ;;  %215 = vmatmul.f32.vlgmr.msra.gmra.mxu2 %v702_v61  ;;  %v248_v31 = vld [vmem:[#allocation8 + $0x18] sm:$0xff]  ;;  %v245_v32 = vld [vmem:[#allocation8] sm:$0xff]  ;;  %v246_v33 = vld [vmem:[#allocation8 + $0x8] sm:$0xff] }
  0x35   :  { %235 = vmatmul.f32.vlgmr.msra.gmra.mxu3 %v704_v62  ;;  %174 = vmatpush.msra.mxu0 %v89_v63  ;;  %v153_v34 = vld [vmem:[%s730_s3] sm:$0x3]  ;;  %v242_v50 = vld [vmem:[#allocation5] sm:$0xff] }
  0x36   :  { %193 = vmatpush.msra.mxu1 %v123_v0  ;;  %175 = vmatmul.f32.vlgmr.msra.gmra.mxu0 %v702_v61  ;;  %v155_v35 = vperm.slane %v153_v34, 0  ;;  %v156_v38 = vperm.slane %v153_v34, 1  ;;  %v277_v56 = vld [vmem:[%s732_s5] sm:$0x3]  ;;  %s642_s5 = smov [#allocation11]  }
  0x37   :  { %283 = vmatpush.msrb.mxu0 %v275_v2  ;;  %v279_v57 = vperm.slane %v277_v56, 0  ;;  %v280_v58 = vperm.slane %v277_v56, 1  ;;  %s401_s26 = sshll.u32 %s642_s5, 4  ;;  %s402_s26 = int_to_ptr.vmem [resolvable:$true] %s401_s26 }
  0x38   :  { %194 = vmatpush.msra.mxu1 %v121_v1 }
  0x39   :  { %195 = vmatmul.f32.vlgmr.msra.gmra.mxu1 %v704_v62  ;;  %284 = vmatpush.msrb.mxu0 %v273_v4 }
  0x3a   :  { %303 = vmatpush.msrb.mxu1 %v276_v3 }
  0x3b   :  { %285 = vmatpush.msrb.mxu0 %v271_v6 }
  0x3c   :  { %304 = vmatpush.msrb.mxu1 %v274_v5 }
  0x3d   :  { %286 = vmatpush.msrb.mxu0 %v269_v8 }
  0x3e   :  { %305 = vmatpush.msrb.mxu1 %v272_v7 }
  0x3f   :  { %287 = vmatpush.msrb.mxu0 %v267_v10 }
  0x40   :  { %306 = vmatpush.msrb.mxu1 %v270_v9 }
  0x41   :  { %288 = vmatpush.msrb.mxu0 %v265_v12 }
  0x42   :  { %307 = vmatpush.msrb.mxu1 %v268_v11 }
  0x43   :  { %289 = vmatpush.msrb.mxu0 %v263_v14 }
  0x44   :  { %308 = vmatpush.msrb.mxu1 %v266_v13 }
  0x45   :  { %290 = vmatpush.msrb.mxu0 %v261_v16 }
  0x46   :  { %309 = vmatpush.msrb.mxu1 %v264_v15 }
  0x47   :  { %291 = vmatpush.msrb.mxu0 %v259_v18 }
  0x48   :  { %310 = vmatpush.msrb.mxu1 %v262_v17 }
  0x49   :  { %292 = vmatpush.msrb.mxu0 %v257_v20 }
  0x4a   :  { %311 = vmatpush.msrb.mxu1 %v260_v19 }
  0x4b   :  { %293 = vmatpush.msrb.mxu0 %v255_v22 }
  0x4c   :  { %312 = vmatpush.msrb.mxu1 %v258_v21 }
  0x4d   :  { %294 = vmatpush.msrb.mxu0 %v253_v24 }
  0x4e   :  { %313 = vmatpush.msrb.mxu1 %v256_v23 }
  0x4f   :  { %295 = vmatpush.msrb.mxu0 %v251_v26 }
  0x50   :  { %314 = vmatpush.msrb.mxu1 %v254_v25 }
  0x51   :  { %296 = vmatpush.msrb.mxu0 %v249_v28 }
  0x52   :  { %315 = vmatpush.msrb.mxu1 %v252_v27 }
  0x53   :  { %297 = vmatpush.msrb.mxu0 %v247_v30 }
  0x54   :  { %316 = vmatpush.msrb.mxu1 %v250_v29 }
  0x55   :  { %298 = vmatpush.msrb.mxu0 %v245_v32 }
  0x56   :  { %317 = vmatpush.msrb.mxu1 %v248_v31 }
  0x58   :  { %318 = vmatpush.msrb.mxu1 %v246_v33 }
  0xb3   :  { %v176_v36 = vpop.f32.mrf.mxu0 }
  0xb4   :  { %v177_v37 = vadd.f32 %v176_v36, %v155_v35 }
  0xb6   :  { %v196_v39 = vpop.f32.mrf.mxu1 }
  0xb7   :  { %v197_v40 = vadd.f32 %v196_v39, %v177_v37  ;;  %v216_v41 = vpop.f32.mrf.mxu2 }
  0xb8   :  { %v236_v42 = vpop.f32.mrf.mxu3  ;;  %v217_v43 = vadd.f32 %v216_v41, %v156_v38 }
  0xb9   :  { %v347_v44 = vmul.f32 %v197_v40, %v197_v40 }
  0xba   :  { %v237_v45 = vadd.f32 %v236_v42, %v217_v43 }
  0xbc   :  { %v239_v46 = vmul.f32 0.5, %v237_v45  ;;  %v346_v47 = vadd.f32 1.0, %v237_v45 }
  0xbe   :  { %v240_v48 = vmul.f32 1.442695, %v239_v46  ;;  %v348_v49 = vsub.f32 %v346_v47, %v347_v44 }
  0xc0   :  { %448 = vpow2.f32 %v240_v48 }
  0xc6   :  { %v449_v51 = vpop.eup %448 }
  0xc7   :  { %v243_v52 = vmul.f32 %v449_v51, %v242_v50  ;;  %v345_v53 = vmul.f32 %v449_v51, %v449_v51 }
  0xc9   :  { %v244_v54 = vadd.f32 %v243_v52, %v197_v40  ;;  %v349_v55 = vsub.f32 %v348_v49, %v345_v53 }
  0xcb   :  { %299 = vmatmul.f32.vlgmr.msrb.gmra.mxu0 %v244_v54  ;;  %384 = vst [vmem:[#allocation13] sm:$0xff] %v244_v54  ;;  %319 = vmatmul.f32.vlgmr.msrb.gmra.mxu1 %v244_v54  ;;  %v350_v24 = vmul.f32 -0.5, %v349_v55 }
 0x148   :  { %v300_v59 = vpop.f32.mrf.mxu0  ;;  %v320_v60 = vpop.f32.mrf.mxu1 }
 0x149   :  { %v301_v63 = vadd.f32 %v300_v59, %v279_v57  ;;  %v321_v0 = vadd.f32 %v320_v60, %v280_v58 }
 0x14b   :  { %v329_v1 = vand.u32 2147483647, %v301_v63  ;;  %382 = vst [vmem:[#allocation11] sm:$0xff] %v301_v63  ;;  %v330_v2 = vand.u32 2147483647, %v321_v0  ;;  %v323_v11 = vmax.f32 %v301_v63, 0.0  ;;  %v325_v12 = vmul.f32 %v301_v63, %v702_v61 }
 0x14c   :  { %383 = vst [vmem:[#allocation11 + $0x8] sm:$0xff] %v321_v0  ;;  %v324_v13 = vmax.f32 %v321_v0, 0.0  ;;  %v326_v14 = vmul.f32 %v321_v0, %v704_v62 }
 0x14d   :  { %v331_v3 = vsub.f32 0.0, %v329_v1  ;;  %v332_v4 = vsub.f32 0.0, %v330_v2  ;;  %v327_v17 = vsub.f32 %v323_v11, %v325_v12  ;;  %406 = dma.vmem_to_hbm [thread:$0]  %s402_s26, 256, %s404_s29, [#allocation12]  }
 0x14e   :  { %v328_v19 = vsub.f32 %v324_v13, %v326_v14  ;;  %417 = dma.vmem_to_hbm [thread:$0]  %s413_s9, 128, %s415_s12, [#allocation12]  }
 0x14f   :  { %v333_v5 = vmul.f32 1.442695, %v331_v3  ;;  %v335_v6 = vmul.f32 1.442695, %v332_v4 }
 0x151   :  { %450 = vpow2.f32 %v333_v5 }
 0x152   :  { %452 = vpow2.f32 %v335_v6 }
 0x157   :  { %v451_v7 = vpop.eup %450 }
 0x158   :  { %v453_v8 = vpop.eup %452  ;;  %v337_v9 = vadd.f32 1.0, %v451_v7 }
 0x159   :  { %v338_v10 = vadd.f32 1.0, %v453_v8 }
 0x15a   :  { %454 = vlog2.f32 %v337_v9 }
 0x15b   :  { %456 = vlog2.f32 %v338_v10 }
 0x160   :  { %v455_v15 = vpop.eup %454 }
 0x161   :  { %v457_v16 = vpop.eup %456  ;;  %v340_v18 = vmul.f32 0.6931472, %v455_v15 }
 0x162   :  { %v342_v20 = vmul.f32 0.6931472, %v457_v16 }
 0x163   :  { %v343_v21 = vadd.f32 %v340_v18, %v327_v17 }
 0x164   :  { %v344_v22 = vadd.f32 %v342_v20, %v328_v19 }
 0x166   :  { %v351_v23 = vadd.f32 %v344_v22, %v343_v21 }
 0x168   :  { %352 = vadd.xlane.f32.xlu0 %v351_v23 }
 0x170   :  { %354 = vadd.xlane.f32.xlu0 %v350_v24 }
 0x1db   :  { %v353_v25 = vpop.xlane.xlu0 %352 }
 0x1dc   :  { %v357_v26 = vsel %vm356_vm0, %v353_v25, 0.0 }
 0x1dd   :  { %358 = vadd.xlane.f32.xlu1 %v357_v26 }
 0x1e3   :  { %v355_v61 = vpop.xlane.xlu0 %354 }
 0x1e4   :  { %v367_v27 = vsel %vm356_vm0, %v355_v61, 0.0 }
 0x1e5   :  { %368 = vadd.xlane.f32.xlu1 %v367_v27 }
 0x250   :  { %v359_v62 = vpop.xlane.xlu1 %358 }
 0x251   :  { %v360_v28 = vrot.slane %v359_v62, 4 }
 0x253   :  { %v361_v29 = vadd.f32 %v360_v28, %v359_v62 }
 0x255   :  { %v362_v30 = vrot.slane %v361_v29, 2 }
 0x257   :  { %v363_v31 = vadd.f32 %v362_v30, %v361_v29 }
 0x258   :  { %v369_v32 = vpop.xlane.xlu1 %368 }
 0x259   :  { %v370_v33 = vrot.slane %v369_v32, 4  ;;  %v364_v34 = vrot.slane %v363_v31, 1 }
 0x25b   :  { %v371_v35 = vadd.f32 %v370_v33, %v369_v32  ;;  %v365_v36 = vadd.f32 %v364_v34, %v363_v31 }
 0x25d   :  { %v372_v37 = vrot.slane %v371_v35, 2  ;;  %435 = vpush %v365_v36 }
 0x25f   :  { %v373_v38 = vadd.f32 %v372_v37, %v371_v35 }
 0x261   :  { %v374_v39 = vrot.slane %v373_v38, 1 }
 0x263   :  { %v375_v40 = vadd.f32 %v374_v39, %v373_v38 }
 0x265   :  { %437 = vpush %v375_v40 }
 0x28e   :  { %s436_s7 = spop %435 }
 0x296   :  { %s438_s8 = spop %437 }
 0x297   :  { %s377_s13 = smul.f32 4.0, %s438_s8 }
 0x299   :  { %s378_s17 = sadd.f32 %s436_s7, %s377_s13 }
 0x29b   :  { %s379_s19 = smul.f32 0.125, %s378_s17 }
 0x29d   :  { %v380_v41 = vstv %s379_s19 }
 0x29e   :  { %381 = vst [vmem:[#allocation10] sm:$0x1] %v380_v41 }
 0x29f   :  { %395 = dma.vmem_to_hbm [thread:$0]  %s391_s18, 16, %s393_s16, [#allocation4]  }
 0x2a0   :  { %632 = dma.done.wait [#allocation4], 16  }
 0x2a1   :  { %633 = vsyncadd [#allocation4], 4294967280 }
 0x2a2   :  { %634 = dma.done.wait [#allocation12], 384  }
 0x2a3   :  { %635 = vsyncadd [#allocation12], 4294966912 }
 0x2a4   :  { %430 = vsyncpa [#allocation3], 1 }
 0x2a5   :  { %431 = vsyncpa [#allocation6], 1 }
 0x2a6   :  { %432 = vsyncpa [#allocation9], 1 }
 0x2a7   :  { %433 = vsyncpa [#allocation4], 1 }
 0x2a8   :  { %434 = vsyncpa [#allocation12], 1 }

</bundles_post_ra>
